<compile_context>
chip_gen: v7x
topology: tpu7x:2x2x1
jax: 0.10.0
libtpu: 0.0.40
codegen_flags: <defaults>
</compile_context>

<pallas_src>
import functools

import jax
import jax.numpy as jnp
from jax.experimental import pallas as pl
from jax.experimental.pallas import tpu as pltpu


def matching_head2_kernel(x_ref, w1t_ref, packc_ref, wdw_ref, wl_ref,
                          wd1_ref, wd2_ref, packe_ref, out_ref, *, l2):
    tn, hw, cin = x_ref.shape
    c = w1t_ref.shape[1]

    # --- conv_6_sep: 1x1 conv as a single tall (TN*HW, Cin) x (Cin, C) bf16 MXU matmul ---
    xm = x_ref[...].reshape(tn * hw, cin)                    # layout-preserving merge
    h = jnp.dot(xm, w1t_ref[...],
                preferred_element_type=jnp.float32)          # (TN*HW, C) f32 accum

    s1 = packc_ref[0:1, :]
    b1 = packc_ref[1:2, :]
    alpha = packc_ref[2:3, :]
    h = h * s1 + b1                                          # folded BN2d #1 (f32 VPU)
    h = jnp.where(h > 0, h, alpha * h)                       # PReLU

    # --- conv_6_dw: full-spatial depthwise conv (BN2 scale pre-folded into wdw) ---
    d = jnp.sum(h.reshape(tn, hw, c) * wdw_ref[...][None, :, :], axis=1)   # (TN, C) f32

    # --- Flatten + Linear(512->E) (BN1d scale folded into wl, BN2/BN1d biases in packe[0]) ---
    e = jnp.dot(d.astype(jnp.bfloat16), wl_ref[...],
                preferred_element_type=jnp.float32) + packe_ref[0:1, :]    # (TN, 128)

    # --- Dense2Layer: Linear + ReLU + Linear + LogSoftmax (lane-padded to 128) ---
    z1 = jnp.dot(e.astype(jnp.bfloat16), wd1_ref[...],
                 preferred_element_type=jnp.float32) + packe_ref[1:2, :]
    z1 = jnp.maximum(z1, 0.0)
    z2 = jnp.dot(z1.astype(jnp.bfloat16), wd2_ref[...],
                 preferred_element_type=jnp.float32) + packe_ref[2:3, :]

    # mask padded logit lanes before the log-softmax, then stable LSE
    lane = jax.lax.broadcasted_iota(jnp.int32, z2.shape, 1)
    z2 = jnp.where(lane < l2, z2, -1e30)
    m = jnp.max(z2, axis=-1, keepdims=True)
    lse = m + jnp.log(jnp.sum(jnp.exp(z2 - m), axis=-1, keepdims=True))
    out_ref[...] = z2 - lse


def fold_bn(gamma, beta, mean, var, eps=1e-5):
    scale = gamma / jnp.sqrt(var + eps)
    bias = beta - mean * scale
    return scale, bias


def prepare_params(params, eps=1e-5):
    """Fold BN into adjacent weights, pack small vectors, pad the tail to 128 lanes."""
    C, Cin = params["w1"].shape[0], params["w1"].shape[1]
    HW = params["wdw"].shape[2] * params["wdw"].shape[3]
    E = params["wl"].shape[0]
    L1 = params["wd1"].shape[0]
    L2 = params["wd2"].shape[0]
    P = 128 * ((max(E, L1, L2) + 127) // 128)

    s1, b1 = fold_bn(*params["bn1"], eps=eps)
    s2, b2 = fold_bn(*params["bn2"], eps=eps)
    s3, b3 = fold_bn(*params["bn3"], eps=eps)

    w1t = params["w1"].reshape(C, Cin).T.astype(jnp.bfloat16)                  # (Cin, C)
    packc = jnp.stack([s1, b1, params["alpha"]], axis=0).astype(jnp.float32)   # (3, C)
    # depthwise weights with BN2 scale folded in; kept f32 (tiny, resident, VPU use)
    wdw = (params["wdw"].reshape(C, HW) * s2[:, None]).T.astype(jnp.float32)   # (HW, C)

    wl_s3 = params["wl"].T * s3[None, :]                                       # (C, E) f32
    b3p = b2 @ wl_s3 + b3                                                      # fold BN2 bias through the linear

    def pad_cols(a, n):
        return jnp.pad(a, ((0, 0), (0, n - a.shape[1])))

    def pad_vec(v, n):
        return jnp.pad(v, ((0, n - v.shape[0]),))

    wl = pad_cols(wl_s3, P).astype(jnp.bfloat16)                               # (C, P)
    wd1 = jnp.pad(params["wd1"].T, ((0, P - E), (0, P - L1))).astype(jnp.bfloat16)   # (P, P)
    wd2 = jnp.pad(params["wd2"].T, ((0, P - L1), (0, P - L2))).astype(jnp.bfloat16)  # (P, P)
    packe = jnp.stack([pad_vec(b3p, P),
                       pad_vec(params["bd1"], P),
                       pad_vec(params["bd2"], P)], axis=0).astype(jnp.float32)       # (3, P)
    return dict(w1t=w1t, packc=packc, wdw=wdw, wl=wl, wd1=wd1, wd2=wd2, packe=packe)


@functools.partial(jax.jit, static_argnames=("L2", "TN"))
def matching_head2(x_nchw, prep, *, L2, TN=8):
    """x_nchw: (N, 128, H, W) float32.  Returns (N, L2) log-probabilities."""
    N, Cin, H, W = x_nchw.shape
    HW = H * W
    P = prep["wl"].shape[1]

    # NCHW -> (N, HW, Cin), bf16.
    # TODO(synk): this transpose+cast is one extra HBM pass over x done by XLA outside
    # the kernel; in production the producer of x should emit NHWC (or the layout change
    # should be fused into it) so the kernel reads x exactly once.
    x = jnp.transpose(x_nchw, (0, 2, 3, 1)).reshape(N, HW, Cin).astype(jnp.bfloat16)

    Npad = ((N + TN - 1) // TN) * TN
    if Npad != N:
        x = jnp.pad(x, ((0, Npad - N), (0, 0), (0, 0)))
    grid = (Npad // TN,)

    kernel = functools.partial(matching_head2_kernel, l2=L2)

    out = pl.pallas_call(
        kernel,
        out_shape=jax.ShapeDtypeStruct((Npad, P), jnp.float32),
        grid_spec=pltpu.PrefetchScalarGridSpec(
            num_scalar_prefetch=0,
            grid=grid,
            in_specs=[
                pl.BlockSpec((TN, HW, Cin), lambda i: (i, 0, 0)),          # x tile (pipelined)
                pl.BlockSpec(prep["w1t"].shape, lambda i: (0, 0)),         # weights stay resident
                pl.BlockSpec(prep["packc"].shape, lambda i: (0, 0)),
                pl.BlockSpec(prep["wdw"].shape, lambda i: (0, 0)),
                pl.BlockSpec(prep["wl"].shape, lambda i: (0, 0)),
                pl.BlockSpec(prep["wd1"].shape, lambda i: (0, 0)),
                pl.BlockSpec(prep["wd2"].shape, lambda i: (0, 0)),
                pl.BlockSpec(prep["packe"].shape, lambda i: (0, 0)),
            ],
            out_specs=pl.BlockSpec((TN, P), lambda i: (i, 0)),
        ),
        compiler_params=pltpu.CompilerParams(
            dimension_semantics=("parallel",),
            vmem_limit_bytes=32 * 1024 * 1024),
    )(x, prep["w1t"], prep["packc"], prep["wdw"], prep["wl"],
      prep["wd1"], prep["wd2"], prep["packe"])

    return out[:N, :L2]


def reference(x_nchw, prep, l2):
    """Pure-JAX reference mirroring the kernel math (same folds / bf16 casts)."""
    N, Cin, H, W = x_nchw.shape
    HW = H * W
    xm = jnp.transpose(x_nchw, (0, 2, 3, 1)).reshape(N * HW, Cin).astype(jnp.bfloat16)
    h = jnp.dot(xm, prep["w1t"], preferred_element_type=jnp.float32)
    s1, b1, alpha = prep["packc"][0:1], prep["packc"][1:2], prep["packc"][2:3]
    h = h * s1 + b1
    h = jnp.where(h > 0, h, alpha * h)
    C = prep["w1t"].shape[1]
    d = jnp.sum(h.reshape(N, HW, C) * prep["wdw"][None], axis=1)
    e = jnp.dot(d.astype(jnp.bfloat16), prep["wl"],
                preferred_element_type=jnp.float32) + prep["packe"][0:1]
    z1 = jnp.maximum(jnp.dot(e.astype(jnp.bfloat16), prep["wd1"],
                             preferred_element_type=jnp.float32) + prep["packe"][1:2], 0.0)
    z2 = jnp.dot(z1.astype(jnp.bfloat16), prep["wd2"],
                 preferred_element_type=jnp.float32) + prep["packe"][2:3]
    z2 = z2[:, :l2]
    return jax.nn.log_softmax(z2, axis=-1)


def make_params(key, Cin, C, H, W, E, L1, L2):
    ks = jax.random.split(key, 16)
    f32 = jnp.float32

    def bn_params(k, n):
        k1, k2, k3, k4 = jax.random.split(k, 4)
        gamma = 1.0 + 0.1 * jax.random.normal(k1, (n,), f32)
        beta = 0.1 * jax.random.normal(k2, (n,), f32)
        mean = 0.1 * jax.random.normal(k3, (n,), f32)
        var = 1.0 + 0.1 * jnp.abs(jax.random.normal(k4, (n,), f32))
        return (gamma, beta, mean, var)

    return {
        # Conv2d(128, 512, 1x1, bias=False): weight (512, 128, 1, 1)
        "w1": 0.05 * jax.random.normal(ks[0], (C, Cin, 1, 1), f32),
        "bn1": bn_params(ks[1], C),
        # PReLU(512): default init 0.25, slightly perturbed for a nontrivial test
        "alpha": 0.25 + 0.01 * jax.random.normal(ks[2], (C,), f32),
        # depthwise Conv2d(512, 512, (H, W), groups=512, bias=False): (512, 1, H, W)
        "wdw": 0.05 * jax.random.normal(ks[3], (C, 1, H, W), f32),
        "bn2": bn_params(ks[4], C),
        # Linear(512, E, bias=False): weight (E, 512)
        "wl": 0.05 * jax.random.normal(ks[5], (E, C), f32),
        "bn3": bn_params(ks[6], E),
        # Dense2Layer
        "wd1": 0.1 * jax.random.normal(ks[7], (L1, E), f32),
        "bd1": 0.05 * jax.random.normal(ks[8], (L1,), f32),
        "wd2": 0.1 * jax.random.normal(ks[9], (L2, L1), f32),
        "bd2": 0.05 * jax.random.normal(ks[10], (L2,), f32),
    }


if __name__ == "__main__":
    # Cin=128 is fixed by conv_6_sep; (H, W) must match the depthwise kernel size.
    N, Cin, H, W = 16, 128, 4, 4
    C = 512                 # conv_6_sep output channels
    E, L1, L2 = 32, 16, 8   # embedding_size, n_l1, n_l2
    TN = 8                  # batch tile -> M = TN*HW = 128 rows per MXU matmul, grid of 2

    key = jax.random.PRNGKey(0)
    kx, kp = jax.random.split(key)
    x = jax.random.normal(kx, (N, Cin, H, W), jnp.float32)
    params = make_params(kp, Cin, C, H, W, E, L1, L2)
    prep = prepare_params(params)

    out = matching_head2(x, prep, L2=L2, TN=TN)
    out = jax.block_until_ready(out)

    ref = reference(x, prep, L2)
    assert out.shape == (N, L2)
    err = float(jnp.max(jnp.abs(out - ref)))
    assert jnp.allclose(out, ref, atol=1e-3, rtol=1e-3), f"mismatch: max abs err {err}"

    print("KERNEL_OK")
</pallas_src>

<mosaic_0001>
module attributes {stable_mosaic.version = 11 : i64} {
  func.func @matching_head2_kernel(%arg0: i32, %arg1: memref<8x16x128xbf16, #tpu.memory_space<vmem>>, %arg2: memref<128x512xbf16, #tpu.memory_space<vmem>>, %arg3: memref<3x512xf32, #tpu.memory_space<vmem>>, %arg4: memref<16x512xf32, #tpu.memory_space<vmem>>, %arg5: memref<512x128xbf16, #tpu.memory_space<vmem>>, %arg6: memref<128x128xbf16, #tpu.memory_space<vmem>>, %arg7: memref<128x128xbf16, #tpu.memory_space<vmem>>, %arg8: memref<3x128xf32, #tpu.memory_space<vmem>>, %arg9: memref<8x128xf32, #tpu.memory_space<vmem>>) attributes {dimension_semantics = [#tpu.dimension_semantics<parallel>], iteration_bounds = array<i64: 2>, scalar_prefetch = 0 : i64, scratch_operands = 0 : i64, tpu.core_type = #tpu.core_type<tc>, window_params = [{transform_indices = @transform_0, window_bounds = array<i64: 8, 16, 128>}, {pipeline_mode = #tpu.pipeline_mode<synchronous>, transform_indices = @transform_1, window_bounds = array<i64: 128, 512>}, {pipeline_mode = #tpu.pipeline_mode<synchronous>, transform_indices = @transform_2, window_bounds = array<i64: 3, 512>}, {pipeline_mode = #tpu.pipeline_mode<synchronous>, transform_indices = @transform_3, window_bounds = array<i64: 16, 512>}, {pipeline_mode = #tpu.pipeline_mode<synchronous>, transform_indices = @transform_4, window_bounds = array<i64: 512, 128>}, {pipeline_mode = #tpu.pipeline_mode<synchronous>, transform_indices = @transform_5, window_bounds = array<i64: 128, 128>}, {pipeline_mode = #tpu.pipeline_mode<synchronous>, transform_indices = @transform_6, window_bounds = array<i64: 128, 128>}, {pipeline_mode = #tpu.pipeline_mode<synchronous>, transform_indices = @transform_7, window_bounds = array<i64: 3, 128>}, {transform_indices = @transform_8, window_bounds = array<i64: 8, 128>}]} {
    %c0 = arith.constant 0 : index
    %c0_0 = arith.constant 0 : index
    %c0_1 = arith.constant 0 : index
    %0 = vector.load %arg1[%c0, %c0_0, %c0_1] : memref<8x16x128xbf16, #tpu.memory_space<vmem>>, vector<8x16x128xbf16>
    %1 = vector.shape_cast %0 : vector<8x16x128xbf16> to vector<128x128xbf16>
    %c0_2 = arith.constant 0 : index
    %c0_3 = arith.constant 0 : index
    %2 = vector.load %arg2[%c0_2, %c0_3] : memref<128x512xbf16, #tpu.memory_space<vmem>>, vector<128x512xbf16>
    %cst = arith.constant dense<0.000000e+00> : vector<128x512xf32>
    %3 = tpu.matmul %1, %2, %cst {dimension_numbers = #tpu.dot_dimension_numbers<[1], [0], [0], [1], [0, 0, 1, 1], [], []>} : vector<128x128xbf16>, vector<128x512xbf16>, vector<128x512xf32> -> vector<128x512xf32>
    %c0_4 = arith.constant 0 : index
    %c0_5 = arith.constant 0 : index
    %4 = vector.load %arg3[%c0_4, %c0_5] : memref<3x512xf32, #tpu.memory_space<vmem>>, vector<1x512xf32>
    %c1 = arith.constant 1 : index
    %c0_6 = arith.constant 0 : index
    %5 = vector.load %arg3[%c1, %c0_6] : memref<3x512xf32, #tpu.memory_space<vmem>>, vector<1x512xf32>
    %c2 = arith.constant 2 : index
    %c0_7 = arith.constant 0 : index
    %6 = vector.load %arg3[%c2, %c0_7] : memref<3x512xf32, #tpu.memory_space<vmem>>, vector<1x512xf32>
    %7 = vector.broadcast %4 : vector<1x512xf32> to vector<128x512xf32>
    %8 = arith.mulf %3, %7 : vector<128x512xf32>
    %9 = vector.broadcast %5 : vector<1x512xf32> to vector<128x512xf32>
    %10 = arith.addf %8, %9 : vector<128x512xf32>
    %cst_8 = arith.constant 0.000000e+00 : f32
    %11 = vector.broadcast %cst_8 : f32 to vector<128x512xf32>
    %12 = arith.cmpf ogt, %10, %11 : vector<128x512xf32>
    %13 = vector.broadcast %6 : vector<1x512xf32> to vector<128x512xf32>
    %14 = arith.mulf %13, %10 : vector<128x512xf32>
    %15 = arith.select %12, %10, %14 : vector<128x512xi1>, vector<128x512xf32>
    %16 = vector.shape_cast %15 : vector<128x512xf32> to vector<8x16x512xf32>
    %c0_9 = arith.constant 0 : index
    %c0_10 = arith.constant 0 : index
    %17 = vector.load %arg4[%c0_9, %c0_10] : memref<16x512xf32, #tpu.memory_space<vmem>>, vector<16x512xf32>
    %18 = vector.shape_cast %17 : vector<16x512xf32> to vector<1x16x512xf32>
    %19 = vector.broadcast %18 : vector<1x16x512xf32> to vector<8x16x512xf32>
    %20 = arith.mulf %16, %19 : vector<8x16x512xf32>
    %cst_11 = arith.constant dense<0.000000e+00> : vector<8x512xf32>
    %21 = vector.multi_reduction <add>, %20, %cst_11 [1] : vector<8x16x512xf32> to vector<8x512xf32>
    %22 = arith.truncf %21 : vector<8x512xf32> to vector<8x512xbf16>
    %c0_12 = arith.constant 0 : index
    %c0_13 = arith.constant 0 : index
    %23 = vector.load %arg5[%c0_12, %c0_13] : memref<512x128xbf16, #tpu.memory_space<vmem>>, vector<512x128xbf16>
    %cst_14 = arith.constant dense<0.000000e+00> : vector<8x128xf32>
    %24 = tpu.matmul %22, %23, %cst_14 {dimension_numbers = #tpu.dot_dimension_numbers<[1], [0], [0], [1], [0, 0, 1, 1], [], []>} : vector<8x512xbf16>, vector<512x128xbf16>, vector<8x128xf32> -> vector<8x128xf32>
    %c0_15 = arith.constant 0 : index
    %c0_16 = arith.constant 0 : index
    %25 = vector.load %arg8[%c0_15, %c0_16] : memref<3x128xf32, #tpu.memory_space<vmem>>, vector<1x128xf32>
    %26 = vector.broadcast %25 : vector<1x128xf32> to vector<8x128xf32>
    %27 = arith.addf %24, %26 : vector<8x128xf32>
    %28 = arith.truncf %27 : vector<8x128xf32> to vector<8x128xbf16>
    %c0_17 = arith.constant 0 : index
    %c0_18 = arith.constant 0 : index
    %29 = vector.load %arg6[%c0_17, %c0_18] : memref<128x128xbf16, #tpu.memory_space<vmem>>, vector<128x128xbf16>
    %cst_19 = arith.constant dense<0.000000e+00> : vector<8x128xf32>
    %30 = tpu.matmul %28, %29, %cst_19 {dimension_numbers = #tpu.dot_dimension_numbers<[1], [0], [0], [1], [0, 0, 1, 1], [], []>} : vector<8x128xbf16>, vector<128x128xbf16>, vector<8x128xf32> -> vector<8x128xf32>
    %c1_20 = arith.constant 1 : index
    %c0_21 = arith.constant 0 : index
    %31 = vector.load %arg8[%c1_20, %c0_21] : memref<3x128xf32, #tpu.memory_space<vmem>>, vector<1x128xf32>
    %32 = vector.broadcast %31 : vector<1x128xf32> to vector<8x128xf32>
    %33 = arith.addf %30, %32 : vector<8x128xf32>
    %cst_22 = arith.constant 0.000000e+00 : f32
    %34 = vector.broadcast %cst_22 : f32 to vector<8x128xf32>
    %35 = arith.maximumf %33, %34 : vector<8x128xf32>
    %36 = arith.truncf %35 : vector<8x128xf32> to vector<8x128xbf16>
    %c0_23 = arith.constant 0 : index
    %c0_24 = arith.constant 0 : index
    %37 = vector.load %arg7[%c0_23, %c0_24] : memref<128x128xbf16, #tpu.memory_space<vmem>>, vector<128x128xbf16>
    %cst_25 = arith.constant dense<0.000000e+00> : vector<8x128xf32>
    %38 = tpu.matmul %36, %37, %cst_25 {dimension_numbers = #tpu.dot_dimension_numbers<[1], [0], [0], [1], [0, 0, 1, 1], [], []>} : vector<8x128xbf16>, vector<128x128xbf16>, vector<8x128xf32> -> vector<8x128xf32>
    %c2_26 = arith.constant 2 : index
    %c0_27 = arith.constant 0 : index
    %39 = vector.load %arg8[%c2_26, %c0_27] : memref<3x128xf32, #tpu.memory_space<vmem>>, vector<1x128xf32>
    %40 = vector.broadcast %39 : vector<1x128xf32> to vector<8x128xf32>
    %41 = arith.addf %38, %40 : vector<8x128xf32>
    %42 = tpu.iota {dimensions = array<i32: 1>} : vector<8x128xi32>
    %c8_i32 = arith.constant 8 : i32
    %43 = vector.broadcast %c8_i32 : i32 to vector<8x128xi32>
    %44 = arith.cmpi slt, %42, %43 : vector<8x128xi32>
    %cst_28 = arith.constant -1.000000e+30 : f32
    %45 = vector.broadcast %cst_28 : f32 to vector<8x128xf32>
    %46 = arith.select %44, %41, %45 : vector<8x128xi1>, vector<8x128xf32>
    %cst_29 = arith.constant dense<0xFF800000> : vector<8xf32>
    %47 = vector.multi_reduction <maximumf>, %46, %cst_29 [1] : vector<8x128xf32> to vector<8xf32>
    %48 = vector.shape_cast %47 : vector<8xf32> to vector<8x1xf32>
    %49 = vector.broadcast %48 : vector<8x1xf32> to vector<8x128xf32>
    %50 = arith.subf %46, %49 : vector<8x128xf32>
    %51 = math.exp %50 : vector<8x128xf32>
    %cst_30 = arith.constant dense<0.000000e+00> : vector<8xf32>
    %52 = vector.multi_reduction <add>, %51, %cst_30 [1] : vector<8x128xf32> to vector<8xf32>
    %53 = vector.shape_cast %52 : vector<8xf32> to vector<8x1xf32>
    %54 = math.log %53 : vector<8x1xf32>
    %55 = arith.addf %48, %54 : vector<8x1xf32>
    %56 = vector.broadcast %55 : vector<8x1xf32> to vector<8x128xf32>
    %57 = arith.subf %46, %56 : vector<8x128xf32>
    %c0_31 = arith.constant 0 : index
    %c0_32 = arith.constant 0 : index
    %58 = vector.load %arg9[%c0_31, %c0_32] : memref<8x128xf32, #tpu.memory_space<vmem>>, vector<8x128xf32>
    tpu.vector_store %arg9[%c0_31, %c0_32], %57 {strides = array<i32>} : memref<8x128xf32, #tpu.memory_space<vmem>>, vector<8x128xf32>,
    return
  }
  func.func @transform_0(%arg0: i32) -> (i32, i32, i32) {
    %c0_i32 = arith.constant 0 : i32
    %c0_i32_0 = arith.constant 0 : i32
    %c0_i32_1 = arith.constant 0 : i32
    return %arg0, %c0_i32, %c0_i32_0 : i32, i32, i32
  }
  func.func @transform_1(%arg0: i32) -> (i32, i32) {
    %c0_i32 = arith.constant 0 : i32
    %c0_i32_0 = arith.constant 0 : i32
    %c0_i32_1 = arith.constant 0 : i32
    return %c0_i32, %c0_i32_0 : i32, i32
  }
  func.func @transform_2(%arg0: i32) -> (i32, i32) {
    %c0_i32 = arith.constant 0 : i32
    %c0_i32_0 = arith.constant 0 : i32
    %c0_i32_1 = arith.constant 0 : i32
    return %c0_i32, %c0_i32_0 : i32, i32
  }
  func.func @transform_3(%arg0: i32) -> (i32, i32) {
    %c0_i32 = arith.constant 0 : i32
    %c0_i32_0 = arith.constant 0 : i32
    %c0_i32_1 = arith.constant 0 : i32
    return %c0_i32, %c0_i32_0 : i32, i32
  }
  func.func @transform_4(%arg0: i32) -> (i32, i32) {
    %c0_i32 = arith.constant 0 : i32
    %c0_i32_0 = arith.constant 0 : i32
    %c0_i32_1 = arith.constant 0 : i32
    return %c0_i32, %c0_i32_0 : i32, i32
  }
  func.func @transform_5(%arg0: i32) -> (i32, i32) {
    %c0_i32 = arith.constant 0 : i32
    %c0_i32_0 = arith.constant 0 : i32
    %c0_i32_1 = arith.constant 0 : i32
    return %c0_i32, %c0_i32_0 : i32, i32
  }
  func.func @transform_6(%arg0: i32) -> (i32, i32) {
    %c0_i32 = arith.constant 0 : i32
    %c0_i32_0 = arith.constant 0 : i32
    %c0_i32_1 = arith.constant 0 : i32
    return %c0_i32, %c0_i32_0 : i32, i32
  }
  func.func @transform_7(%arg0: i32) -> (i32, i32) {
    %c0_i32 = arith.constant 0 : i32
    %c0_i32_0 = arith.constant 0 : i32
    %c0_i32_1 = arith.constant 0 : i32
    return %c0_i32, %c0_i32_0 : i32, i32
  }
  func.func @transform_8(%arg0: i32) -> (i32, i32) {
    %c0_i32 = arith.constant 0 : i32
    %c0_i32_0 = arith.constant 0 : i32
    return %arg0, %c0_i32 : i32, i32
  }
}

</mosaic_0001>

<bundles_post_ra>
// kernel: matching_head2.1
= control target key start
LH: loop header
LB: loop body
LE: loop exit
PB: predicated region body
PF: predicated region fallthrough
CT: control target
= control target key end

     0   :  { %13 = vsyncpa [#allocation3], 0  ;;  %s3805_s0 = inlined_call_operand.vmem [shape: bf16[16,16,128], index: 0, kind: input, shape index: {}]   ;;  %s3806_s1 = inlined_call_operand.vmem [shape: bf16[128,512], index: 1, kind: input, shape index: {}]   ;;  %s3807_s2 = inlined_call_operand.hbm [shape: f32[3,512], index: 2, kind: input, shape index: {}]   ;;  %s3808_s3 = inlined_call_operand.vmem [shape: f32[16,512], index: 3, kind: input, shape index: {}]   ;;  %s3809_s4 = inlined_call_operand.hbm [shape: bf16[512,128], index: 4, kind: input, shape index: {}]   ;;  %s3810_s5 = inlined_call_operand.vmem [shape: bf16[128,128], index: 5, kind: input, shape index: {}]   ;;  %s3811_s6 = inlined_call_operand.hbm [shape: bf16[128,128], index: 6, kind: input, shape index: {}]   ;;  %s3812_s7 = inlined_call_operand.vmem [shape: f32[3,128], index: 7, kind: input, shape index: {}]   ;;  %s3813_s8 = inlined_call_operand.vmem [shape: f32[16,128], index: 8, kind: output, shape index: {}]  }
   0x1   :  { %14 = vsyncpa [#allocation5], 0  ;;  %s2843_s27 = smov 0  }
   0x2 LB: > { %s2790_s28 = smov [#allocation4]   ;;  %s2849_s30 = sadd.s32 4294967295, %s2788_s27   ;;  %s2788_s27 = sphi %s2843_s27, %s20_s27  }
   0x3   : > { %s253_s29 = sshll.u32 %s2790_s28, 4  ;;  %p2321_p0 = scmp.ge.s32.totalorder %s2788_s27, 1  ;;  %s2858_s29 = int_to_ptr.vmem [resolvable:$true] %s253_s29 }
   0x4   : > { %p224_p1 = scmp.lt.s32.totalorder %s2788_s27, 3  ;;  %p2552_p2 = scmp.eq.s32.totalorder %s2849_s30, 0 }
   0x5   : > { %s2791_s10 = smov [#allocation2]   ;;  %s2792_s13 = smov [#allocation6]  }
   0x6   : > { %p2854_p3 = pnand %p2321_p0, %p224_p1  ;;  %s240_s11 = sshll.u32 %s2791_s10, 4  ;;  %s2868_s11 = int_to_ptr.vmem [resolvable:$true] %s240_s11 }
   0x7   : > { %s269_s14 = sshll.u32 %s2792_s13, 4  ;;  %s2690_s17 = scalar_lea.hbm %s3809_s4, 4096  ;;  %s2870_s14 = int_to_ptr.vmem [resolvable:$true] %s269_s14 }
   0x8   : > { %p2542_p4 = pneg %p2854_p3  ;;  %p2691_p6 = scmp.ne.s32.totalorder %s3809_s4, %s2690_s17 }
   0x9   : > { %p2697_p10 = scmp.lt.u32.totalorder %s2690_s17, %s3809_s4 }
   0xa   : > { %p2864_p5 = pnand %p2552_p2, %p2542_p4 }
   0xc   : > { %p2880_p7 = pneg %p2864_p5 }
   0xe   : > { %p2693_p8 = pnand %p2880_p7, %p2691_p6 }
  0x10   : > { %p2694_p9 = pneg %p2693_p8 }
  0x12   : > { %p2699_p11 = pnand %p2697_p10, %p2694_p9 }
  0x14   : > { %2702 = shalt.err (!%p2699_p11)
}
  0x15   : > { %s2703_s23 = scalar_lea.vmem %s2858_s29, 4096  ;;  %p2711_p1 = scmp.lt.s32.totalorder %s2858_s29, %s2858_s29 }
  0x16   : > { %p2704_p12 = scmp.ne.s32.totalorder %s2858_s29, %s2703_s23  ;;  %p2712_p4 = scmp.lt.s32.totalorder %s2703_s23, %s2703_s23 }
  0x18   : > { %p2706_p13 = pnand %p2704_p12, %p2880_p7  ;;  %p2713_p6 = por %p2712_p4, %p2711_p1 }
  0x1a   : > { %p2707_p0 = pneg %p2706_p13 }
  0x1c   : > { %p2714_p8 = pnand %p2713_p6, %p2707_p0 }
  0x1e   : > { %2717 = shalt.err (!%p2714_p8)
}
  0x1f   : > { %s2793_s24 = smov 64   ;;  %s2794_s25 = smov 4  }
  0x20   : > { %2548 = dma.hbm_to_vmem [thread:$0]  (!%p2864_p5), %s3809_s4, 4096, %s2858_s29, [#allocation5], %s2793_s24, %s2793_s24, %s2794_s25  }
  0x21   : > { %s2718_s15 = scalar_lea.hbm %s3807_s2, 256 }
  0x22   : > { %p2719_p9 = scmp.ne.s32.totalorder %s3807_s2, %s2718_s15  ;;  %p2725_p12 = scmp.lt.u32.totalorder %s2718_s15, %s3807_s2 }
  0x24   : > { %p2721_p10 = pnand %p2719_p9, %p2880_p7 }
  0x26   : > { %p2722_p11 = pneg %p2721_p10 }
  0x28   : > { %p2727_p13 = pnand %p2725_p12, %p2722_p11 }
  0x2a   : > { %2730 = shalt.err (!%p2727_p13)
}
  0x2b   : > { %s2731_s29 = scalar_lea.vmem %s2868_s11, 256  ;;  %p2739_p6 = scmp.lt.s32.totalorder %s2868_s11, %s2868_s11 }
  0x2c   : > { %p2732_p0 = scmp.ne.s32.totalorder %s2868_s11, %s2731_s29  ;;  %p2740_p8 = scmp.lt.s32.totalorder %s2731_s29, %s2731_s29 }
  0x2e   : > { %p2734_p1 = pnand %p2732_p0, %p2880_p7  ;;  %p2741_p9 = por %p2740_p8, %p2739_p6 }
  0x30   : > { %p2735_p4 = pneg %p2734_p1 }
  0x32   : > { %p2742_p10 = pnand %p2741_p9, %p2735_p4 }
  0x34   : > { %2745 = shalt.err (!%p2742_p10)
}
  0x35   : > { %2545 = dma.hbm_to_vmem [thread:$0]  (!%p2864_p5), %s3807_s2, 256, %s2868_s11, [#allocation3]  }
  0x36   : > { %s2746_s28 = scalar_lea.hbm %s3811_s6, 1024 }
  0x37   : > { %p2747_p11 = scmp.ne.s32.totalorder %s3811_s6, %s2746_s28  ;;  %p2753_p0 = scmp.lt.u32.totalorder %s2746_s28, %s3811_s6 }
  0x39   : > { %p2749_p12 = pnand %p2747_p11, %p2880_p7 }
  0x3b   : > { %p2750_p13 = pneg %p2749_p12 }
  0x3d   : > { %p2755_p1 = pnand %p2753_p0, %p2750_p13 }
  0x3f   : > { %2758 = shalt.err (!%p2755_p1)
}
  0x40   : > { %s2759_s11 = scalar_lea.vmem %s2870_s14, 1024  ;;  %p2767_p9 = scmp.lt.s32.totalorder %s2870_s14, %s2870_s14 }
  0x41   : > { %p2760_p4 = scmp.ne.s32.totalorder %s2870_s14, %s2759_s11  ;;  %p2768_p10 = scmp.lt.s32.totalorder %s2759_s11, %s2759_s11 }
  0x43   : > { %p2762_p6 = pnand %p2760_p4, %p2880_p7  ;;  %p2769_p11 = por %p2768_p10, %p2767_p9 }
  0x45   : > { %p2763_p8 = pneg %p2762_p6 }
  0x47   : > { %p2770_p12 = pnand %p2769_p11, %p2763_p8 }
  0x49   : > { %2773 = shalt.err (!%p2770_p12)
}
  0x4a   : > { %2551 = dma.hbm_to_vmem [thread:$0]  (!%p2864_p5), %s3811_s6, 1024, %s2870_s14, [#allocation5], %s2793_s24, %s2793_s24, %s2794_s25  }
  0x4b   : > { %298 = sbr.rel (%p2854_p3) target bundleno = 1484 (0x5cc), region = 52 }
  0x52   : > { %2779 = dma.done.wait (%p2552_p2), [#allocation3], 256  }
  0x53   : > { %2781 = vsyncadd (%p2552_p2), [#allocation3], 4294967040 }
  0x54   : > { %2783 = dma.done.wait (%p2552_p2), [#allocation5], 5120  }
  0x55   : > { %2785 = vsyncadd (%p2552_p2), [#allocation5], 4294962176  ;;  %v2795_v0 = vmov 0   ;;  %v2574_v1 = vld [vmem:[%s3806_s1 + $0x4] ss:$16 sps:$4 sm:$0xff]   ;;  %s2330_s17 = sshll.u32 %s2849_s30, 3  ;;  %v3814_v45 = vlaneseq }
  0x56   : > { %640 = vmatprep.mubr.bf16.mxu0 %v2795_v0  ;;  %753 = vmatprep.mubr.bf16.mxu1 %v2795_v0  ;;  %v2576_v2 = vld [vmem:[%s3806_s1 + $0xc] ss:$16 sps:$4 sm:$0xff]   ;;  %v2578_v3 = vld [vmem:[%s3806_s1] ss:$16 sps:$4 sm:$0xff]   ;;  %v2579_v4 = vld [vmem:[%s3806_s1 + $0x8] ss:$16 sps:$4 sm:$0xff]  }
  0x57   : > { %608 = vmatprep.subr.bf16.mxu0 %v2574_v1  ;;  %721 = vmatprep.subr.bf16.mxu1 %v2576_v2  ;;  %v2580_v5 = vld [vmem:[%s3806_s1 + $0x24] ss:$16 sps:$4 sm:$0xff]   ;;  %v2582_v6 = vld [vmem:[%s3806_s1 + $0x2c] ss:$16 sps:$4 sm:$0xff]   ;;  %v2584_v7 = vld [vmem:[%s3806_s1 + $0x20] ss:$16 sps:$4 sm:$0xff]  }
  0x58   : > { %609 = vmatpush1.bf16.msra.mxu0 %v2578_v3  ;;  %722 = vmatpush1.bf16.msra.mxu1 %v2579_v4  ;;  %v2585_v8 = vld [vmem:[%s3806_s1 + $0x28] ss:$16 sps:$4 sm:$0xff]   ;;  %v2586_v9 = vld [vmem:[%s3806_s1 + $0x44] ss:$16 sps:$4 sm:$0xff]   ;;  %v2588_v10 = vld [vmem:[%s3806_s1 + $0x4c] ss:$16 sps:$4 sm:$0xff]  }
  0x59   : > { %610 = vmatprep.subr.bf16.mxu0 %v2580_v5  ;;  %723 = vmatprep.subr.bf16.mxu1 %v2582_v6  ;;  %v2590_v11 = vld [vmem:[%s3806_s1 + $0x40] ss:$16 sps:$4 sm:$0xff]   ;;  %v2591_v12 = vld [vmem:[%s3806_s1 + $0x48] ss:$16 sps:$4 sm:$0xff]   ;;  %v2592_v13 = vld [vmem:[%s3806_s1 + $0x64] ss:$16 sps:$4 sm:$0xff]  }
  0x5a   : > { %v2594_v14 = vld [vmem:[%s3806_s1 + $0x6c] ss:$16 sps:$4 sm:$0xff]   ;;  %p341_p2 = scmp.lt.s32.totalorder %s2330_s17, 15  ;;  %v2596_v15 = vld [vmem:[%s3806_s1 + $0x60] ss:$16 sps:$4 sm:$0xff]   ;;  %v841_v50 = vshrl.u32 %v3814_v45, 7 }
  0x5b   : > { %v2597_v16 = vld [vmem:[%s3806_s1 + $0x68] ss:$16 sps:$4 sm:$0xff]   ;;  %v2598_v17 = vld [vmem:[%s3806_s1 + $0x84] ss:$16 sps:$4 sm:$0xff]   ;;  %v2600_v18 = vld [vmem:[%s3806_s1 + $0x8c] ss:$16 sps:$4 sm:$0xff]  }
  0x5c   : > { %611 = vmatpush1.bf16.msra.mxu0 %v2584_v7  ;;  %724 = vmatpush1.bf16.msra.mxu1 %v2585_v8  ;;  %s3875_s17 = smov (!%p341_p2, %s2330_s17), 15  ;;  %v2602_v19 = vld [vmem:[%s3806_s1 + $0x80] ss:$16 sps:$4 sm:$0xff]   ;;  %v2603_v20 = vld [vmem:[%s3806_s1 + $0x88] ss:$16 sps:$4 sm:$0xff]   ;;  %v842_v51 = vsub.s32 0, %v841_v50 }
  0x5d   : > { %612 = vmatprep.subr.bf16.mxu0 %v2586_v9  ;;  %725 = vmatprep.subr.bf16.mxu1 %v2588_v10  ;;  %v2604_v21 = vld [vmem:[%s3806_s1 + $0xa4] ss:$16 sps:$4 sm:$0xff]   ;;  %v2606_v22 = vld [vmem:[%s3806_s1 + $0xac] ss:$16 sps:$4 sm:$0xff]   ;;  %s2427_s19 = sshll.u32 %s3875_s17, 3  ;;  %v850_v52 = vsub.s32 2, %v841_v50 }
  0x5e   : > { %v2608_v23 = vld [vmem:[%s3806_s1 + $0xa0] ss:$16 sps:$4 sm:$0xff]   ;;  %v2609_v24 = vld [vmem:[%s3806_s1 + $0xa8] ss:$16 sps:$4 sm:$0xff]   ;;  %v2610_v25 = vld [vmem:[%s3806_s1 + $0xc4] ss:$16 sps:$4 sm:$0xff]   ;;  %s3044_s15 = scalar_lea.vmem %s3805_s0, %s2427_s19 }
  0x5f   : > { %v2612_v26 = vld [vmem:[%s3806_s1 + $0xcc] ss:$16 sps:$4 sm:$0xff]   ;;  %v2614_v27 = vld [vmem:[%s3806_s1 + $0xc0] ss:$16 sps:$4 sm:$0xff]   ;;  %v2615_v28 = vld [vmem:[%s3806_s1 + $0xc8] ss:$16 sps:$4 sm:$0xff]  }
  0x60   : > { %613 = vmatpush1.bf16.msra.mxu0 %v2590_v11  ;;  %726 = vmatpush1.bf16.msra.mxu1 %v2591_v12  ;;  %v2616_v29 = vld [vmem:[%s3806_s1 + $0xe4] ss:$16 sps:$4 sm:$0xff]   ;;  %v2618_v30 = vld [vmem:[%s3806_s1 + $0xec] ss:$16 sps:$4 sm:$0xff]   ;;  %v2620_v31 = vld [vmem:[%s3806_s1 + $0xe0] ss:$16 sps:$4 sm:$0xff]  }
  0x61   : > { %614 = vmatprep.subr.bf16.mxu0 %v2592_v13  ;;  %727 = vmatprep.subr.bf16.mxu1 %v2594_v14  ;;  %v2621_v32 = vld [vmem:[%s3806_s1 + $0xe8] ss:$16 sps:$4 sm:$0xff]   ;;  %v2622_v33 = vld [vmem:[%s3044_s15] sm:$0xff]   ;;  %v2624_v35 = vld [vmem:[%s3044_s15 + $0x10] sm:$0xff]   ;;  %v846_v54 = vsub.s32 1, %v841_v50  ;;  %v854_v55 = vsub.s32 3, %v841_v50 }
  0x62   : > { %v2623_v34 = vld [vmem:[%s3044_s15 + $0x8] sm:$0xff]   ;;  %v2625_v36 = vld [vmem:[%s3044_s15 + $0x18] sm:$0xff]   ;;  %v2626_v37 = vld [vmem:[%s3044_s15 + $0x20] sm:$0xff]   ;;  %p347_p3 = scmp.lt.s32.totalorder %s2849_s30, 1 }
  0x63   : > { %v2627_v38 = vld [vmem:[%s3044_s15 + $0x28] sm:$0xff]   ;;  %v2628_v39 = vld [vmem:[%s3044_s15 + $0x30] sm:$0xff]   ;;  %v2629_v40 = vld [vmem:[%s3044_s15 + $0x38] sm:$0xff]  }
  0x64   : > { %615 = vmatpush1.bf16.msra.mxu0 %v2596_v15  ;;  %728 = vmatpush1.bf16.msra.mxu1 %v2597_v16  ;;  %v2630_v41 = vld [vmem:[#allocation4 + $0x40] sm:$0xff]   ;;  %v2634_v46 = vld [vmem:[#allocation4 + $0x48] sm:$0xff]   ;;  %v834_v53 = vld [vmem:[#allocation2] ss:$4 sm:$0xf]  ;;  %s3877_s30 = smov (!%p347_p3, %s2849_s30), 1 }
  0x65   : > { %616 = vmatprep.subr.bf16.mxu0 %v2598_v17  ;;  %729 = vmatprep.subr.bf16.mxu1 %v2600_v18  ;;  %v2631_v42 = vld [vmem:[#allocation4] sm:$0xff]   ;;  %v2635_v47 = vld [vmem:[#allocation4 + $0x8] sm:$0xff]   ;;  %v836_v56 = vld [vmem:[#allocation2 + $0x1] ss:$4 sm:$0xf]  ;;  %v3090_v57 = vrot.slane %v834_v53, %v842_v51  ;;  %v3092_v58 = vrot.slane %v834_v53, %v850_v52  ;;  %v3094_v60 = vrot.slane %v834_v53, %v846_v54  ;;  %s2333_s24 = sshll.u32 %s3877_s30, 3 }
  0x66   : > { %v2632_v43 = vld [vmem:[#allocation4 + $0xc0] sm:$0xff]   ;;  %v2636_v48 = vld [vmem:[#allocation4 + $0xc8] sm:$0xff]   ;;  %v838_v59 = vld [vmem:[#allocation2 + $0x2] ss:$4 sm:$0xf]  ;;  %v3096_v61 = vrot.slane %v834_v53, %v854_v55  ;;  %v3098_v62 = vrot.slane %v836_v56, %v842_v51  ;;  %v3100_v63 = vrot.slane %v836_v56, %v850_v52  ;;  %v3102_v2 = vrot.slane %v836_v56, %v846_v54  ;;  %s350_s29 = scalar_lea.vmem %s3813_s8, %s2333_s24 }
  0x67   : > { %v2633_v44 = vld [vmem:[#allocation4 + $0x80] sm:$0xff]   ;;  %v2637_v49 = vld [vmem:[#allocation4 + $0x88] sm:$0xff]   ;;  %v3104_v3 = vrot.slane %v836_v56, %v854_v55  ;;  %v3107_v5 = vrot.slane %v838_v59, %v842_v51  ;;  %v3110_v7 = vrot.slane %v838_v59, %v850_v52  ;;  %v3113_v11 = vrot.slane %v838_v59, %v846_v54  ;;  %v3160_v52 = vld [vmem:[%s3808_s3 + $0x20] sm:$0xff] }
  0x68   : > { %617 = vmatpush1.bf16.msra.mxu0 %v2602_v19  ;;  %730 = vmatpush1.bf16.msra.mxu1 %v2603_v20  ;;  %v3116_v13 = vrot.slane %v838_v59, %v854_v55  ;;  %v3168_v56 = vld [vmem:[%s3808_s3 + $0x30] sm:$0xff] }
  0x69   : > { %618 = vmatprep.subr.bf16.mxu0 %v2604_v21  ;;  %731 = vmatprep.subr.bf16.mxu1 %v2606_v22  ;;  %v2638_v22 = vld [vmem:[#allocation4 + $0x50] sm:$0xff]  }
  0x6c   : > { %619 = vmatpush1.bf16.msra.mxu0 %v2608_v23  ;;  %732 = vmatpush1.bf16.msra.mxu1 %v2609_v24  ;;  %v3125_v23 = vld [vmem:[%s3808_s3] sm:$0xff] }
  0x6d   : > { %620 = vmatprep.subr.bf16.mxu0 %v2610_v25  ;;  %733 = vmatprep.subr.bf16.mxu1 %v2612_v26 }
  0x70   : > { %621 = vmatpush1.bf16.msra.mxu0 %v2614_v27  ;;  %734 = vmatpush1.bf16.msra.mxu1 %v2615_v28 }
  0x71   : > { %622 = vmatprep.subr.bf16.mxu0 %v2616_v29  ;;  %735 = vmatprep.subr.bf16.mxu1 %v2618_v30  ;;  %v3136_v30 = vld [vmem:[%s3808_s3 + $0x10] sm:$0xff] }
  0x74   : > { %623 = vmatpush1.bf16.msra.mxu0 %v2620_v31  ;;  %736 = vmatpush1.bf16.msra.mxu1 %v2621_v32  ;;  %v3141_v31 = vld [vmem:[%s3808_s3 + $0x8] sm:$0xff]  ;;  %v3146_v32 = vld [vmem:[%s3808_s3 + $0x18] sm:$0xff] }
  0x75   : > { %2428 = vmatprep.subr.bf16.mxu0 %v2630_v41  ;;  %2450 = vmatprep.subr.bf16.mxu1 %v2632_v43 }
  0x77   : > { %641 = vmatmul.mubr.bf16.vlgmr.msra.gmra.mrb[0].mxu0 %v2622_v33  ;;  %754 = vmatmul.mubr.bf16.vlgmr.msra.gmra.mrb[0].mxu1 %v2622_v33 }
  0x78   : > { %650 = vmatprep.mubr.bf16.mxu0 %v2795_v0  ;;  %763 = vmatprep.mubr.bf16.mxu1 %v2795_v0 }
  0x79   : > { %2429 = vmatpush3.bf16.msra.mxu0 %v2631_v42  ;;  %2451 = vmatpush3.bf16.msra.mxu1 %v2633_v44 }
  0x7a   : > { %2430 = vmatprep.subr.bf16.mxu0 %v2634_v46  ;;  %2452 = vmatprep.subr.bf16.mxu1 %v2636_v48 }
  0x7d   : > { %2431 = vmatpush3.bf16.msra.mxu0 %v2635_v47  ;;  %2453 = vmatpush3.bf16.msra.mxu1 %v2637_v49 }
  0x7e   : > { %2432 = vmatprep.subr.bf16.mxu0 %v2638_v22 }
  0x7f   : > { %651 = vmatmul.mubr.bf16.gmra.mrb[4].mxu0 %v2623_v34  ;;  %764 = vmatmul.mubr.bf16.gmra.mrb[4].mxu1 %v2623_v34 }
  0x80   : > { %660 = vmatprep.mubr.bf16.mxu0 %v2795_v0  ;;  %773 = vmatprep.mubr.bf16.mxu1 %v2795_v0 }
  0x87   : > { %661 = vmatmul.mubr.bf16.gmra.mrb[8].mxu0 %v2624_v35  ;;  %774 = vmatmul.mubr.bf16.gmra.mrb[8].mxu1 %v2624_v35  ;;  %v2639_v35 = vld [vmem:[#allocation4 + $0x10] sm:$0xff]  }
  0x88   : > { %670 = vmatprep.mubr.bf16.mxu0 %v2795_v0  ;;  %783 = vmatprep.mubr.bf16.mxu1 %v2795_v0 }
  0x89   : > { %2433 = vmatpush3.bf16.msra.mxu0 %v2639_v35 }
  0x8f   : > { %671 = vmatmul.mubr.bf16.gmra.mrb[12].mxu0 %v2625_v36  ;;  %784 = vmatmul.mubr.bf16.gmra.mrb[12].mxu1 %v2625_v36  ;;  %v2640_v36 = vld [vmem:[#allocation4 + $0xd0] sm:$0xff]  }
  0x90   : > { %680 = vmatprep.mubr.bf16.mxu0 %v2795_v0  ;;  %793 = vmatprep.mubr.bf16.mxu1 %v2795_v0 }
  0x91   : > { %2454 = vmatprep.subr.bf16.mxu1 %v2640_v36 }
  0x97   : > { %681 = vmatmul.mubr.bf16.gmra.mrb[16].mxu0 %v2626_v37  ;;  %794 = vmatmul.mubr.bf16.gmra.mrb[16].mxu1 %v2626_v37  ;;  %v2641_v37 = vld [vmem:[#allocation4 + $0x90] sm:$0xff]  }
  0x98   : > { %690 = vmatprep.mubr.bf16.mxu0 %v2795_v0  ;;  %803 = vmatprep.mubr.bf16.mxu1 %v2795_v0 }
  0x99   : > { %2455 = vmatpush3.bf16.msra.mxu1 %v2641_v37 }
  0x9f   : > { %691 = vmatmul.mubr.bf16.gmra.mrb[20].mxu0 %v2627_v38  ;;  %804 = vmatmul.mubr.bf16.gmra.mrb[20].mxu1 %v2627_v38 }
  0xa0   : > { %700 = vmatprep.mubr.bf16.mxu0 %v2795_v0  ;;  %813 = vmatprep.mubr.bf16.mxu1 %v2795_v0 }
  0xa7   : > { %701 = vmatmul.mubr.bf16.gmra.mrb[24].mxu0 %v2628_v39  ;;  %814 = vmatmul.mubr.bf16.gmra.mrb[24].mxu1 %v2628_v39 }
  0xa8   : > { %710 = vmatprep.mubr.bf16.mxu0 %v2795_v0  ;;  %823 = vmatprep.mubr.bf16.mxu1 %v2795_v0 }
  0xaf   : > { %711 = vmatmul.mubr.bf16.gmra.mrb[28].mxu0 %v2629_v40  ;;  %824 = vmatmul.mubr.bf16.gmra.mrb[28].mxu1 %v2629_v40 }
 0x14a   : > { %v642_v0 = vpop.f32.mrb[0].mxu0  ;;  %v755_v1 = vpop.f32.mrb[0].mxu1 }
 0x14b   : > { %v860_v4 = vmul.f32 %v3090_v57, %v642_v0  ;;  %v862_v6 = vmul.f32 %v3092_v58, %v755_v1  ;;  %v644_v8 = vpop.f32.mrb[1].mxu0  ;;  %v757_v9 = vpop.f32.mrb[1].mxu1 }
 0x14c   : > { %v861_v10 = vmul.f32 %v3094_v60, %v644_v8  ;;  %v863_v12 = vmul.f32 %v3096_v61, %v757_v9  ;;  %v646_v14 = vpop.f32.mrb[2].mxu0  ;;  %v759_v15 = vpop.f32.mrb[2].mxu1 }
 0x14d   : > { %v945_v16 = vadd.f32 %v3098_v62, %v860_v4  ;;  %v947_v17 = vadd.f32 %v3100_v63, %v862_v6  ;;  %v864_v18 = vmul.f32 %v3090_v57, %v646_v14  ;;  %v866_v19 = vmul.f32 %v3092_v58, %v759_v15  ;;  %v648_v20 = vpop.f32.mrb[3].mxu0  ;;  %v761_v21 = vpop.f32.mrb[3].mxu1 }
 0x14e   : > { %v946_v24 = vadd.f32 %v3102_v2, %v861_v10  ;;  %v948_v25 = vadd.f32 %v3104_v3, %v863_v12  ;;  %v865_v26 = vmul.f32 %v3094_v60, %v648_v20  ;;  %v867_v27 = vmul.f32 %v3096_v61, %v761_v21  ;;  %v3189_v21 = vld [vmem:[%s3808_s3 + $0x38] sm:$0xff] }
 0x14f   : > { %vm1009_vm0 = vcmp.gt.f32.partialorder %v945_v16, 0.0  ;;  %v1094_v28 = vmul.f32 %v3107_v5, %v945_v16  ;;  %vm1011_vm1 = vcmp.gt.f32.partialorder %v947_v17, 0.0  ;;  %v1096_v29 = vmul.f32 %v3110_v7, %v947_v17 }
 0x150   : > { %vm1010_vm2 = vcmp.gt.f32.partialorder %v946_v24, 0.0  ;;  %v1095_v33 = vmul.f32 %v3113_v11, %v946_v24  ;;  %vm1012_vm3 = vcmp.gt.f32.partialorder %v948_v25, 0.0  ;;  %v1097_v34 = vmul.f32 %v3116_v13, %v948_v25 }
 0x151   : > { %v1158_v38 = vsel %vm1009_vm0, %v945_v16, %v1094_v28  ;;  %v1160_v39 = vsel %vm1011_vm1, %v947_v17, %v1096_v29  ;;  %v949_v40 = vadd.f32 %v3098_v62, %v864_v18  ;;  %v951_v41 = vadd.f32 %v3100_v63, %v866_v19  ;;  %v3182_v18 = vld [vmem:[%s3808_s3 + $0x28] sm:$0xff] }
 0x152   : > { %v1230_v42 = vmul.f32 %v3125_v23, %v1158_v38  ;;  %v1232_v43 = vmul.f32 %v3136_v30, %v1160_v39  ;;  %v1159_v44 = vsel %vm1010_vm2, %v946_v24, %v1095_v33  ;;  %v1161_v46 = vsel %vm1012_vm3, %v948_v25, %v1097_v34  ;;  %v652_v47 = vpop.f32.mrb[4].mxu0  ;;  %v765_v48 = vpop.f32.mrb[4].mxu1 }
 0x153   : > { %v1231_v49 = vmul.f32 %v3141_v31, %v1159_v44  ;;  %v1233_v50 = vmul.f32 %v3146_v32, %v1161_v46  ;;  %vm1013_vm4 = vcmp.gt.f32.partialorder %v949_v40, 0.0  ;;  %v1098_v51 = vmul.f32 %v3107_v5, %v949_v40  ;;  %v654_v53 = vpop.f32.mrb[5].mxu0  ;;  %v3162_v54 = vpop.f32.mrb[5].mxu1 }
 0x154   : > { %vm1015_vm5 = vcmp.gt.f32.partialorder %v951_v41, 0.0  ;;  %v1100_v55 = vmul.f32 %v3110_v7, %v951_v41  ;;  %v950_v59 = vadd.f32 %v3102_v2, %v865_v26  ;;  %v952_v0 = vadd.f32 %v3104_v3, %v867_v27  ;;  %v656_v1 = vpop.f32.mrb[6].mxu0  ;;  %v769_v4 = vpop.f32.mrb[6].mxu1 }
 0x155   : > { %v1162_v6 = vsel %vm1013_vm4, %v949_v40, %v1098_v51  ;;  %v868_v8 = vmul.f32 %v3090_v57, %v652_v47  ;;  %v870_v9 = vmul.f32 %v3092_v58, %v765_v48  ;;  %v869_v10 = vmul.f32 %v3094_v60, %v654_v53  ;;  %v658_v12 = vpop.f32.mrb[7].mxu0  ;;  %v3175_v14 = vpop.f32.mrb[7].mxu1 }
 0x156   : > { %v1234_v15 = vmul.f32 %v3160_v52, %v1162_v6  ;;  %v1164_v16 = vsel %vm1015_vm5, %v951_v41, %v1100_v55  ;;  %vm1014_vm6 = vcmp.gt.f32.partialorder %v950_v59, 0.0  ;;  %v1099_v17 = vmul.f32 %v3113_v11, %v950_v59 }
 0x157   : > { %v1236_v19 = vmul.f32 %v3168_v56, %v1164_v16  ;;  %vm1016_vm7 = vcmp.gt.f32.partialorder %v952_v0, 0.0  ;;  %v1101_v20 = vmul.f32 %v3116_v13, %v952_v0  ;;  %v953_v22 = vadd.f32 %v3098_v62, %v868_v8  ;;  %v2642_v8 = vld [vmem:[#allocation4 + $0x58] sm:$0xff]  }
 0x158   : > { %v1294_v24 = vadd.f32 %v1234_v15, %v1230_v42  ;;  %v1163_v25 = vsel %vm1014_vm6, %v950_v59, %v1099_v17  ;;  %v955_v26 = vadd.f32 %v3100_v63, %v870_v9  ;;  %v954_v27 = vadd.f32 %v3102_v2, %v869_v10  ;;  %2434 = vmatprep.subr.bf16.mxu0 %v2642_v8 }
 0x159   : > { %v1308_v28 = vadd.f32 %v1236_v19, %v1232_v43  ;;  %v1235_v29 = vmul.f32 %v3182_v18, %v1163_v25  ;;  %v1165_v33 = vsel %vm1016_vm7, %v952_v0, %v1101_v20  ;;  %vm1017_vm8 = vcmp.gt.f32.partialorder %v953_v22, 0.0 }
 0x15a   : > { %v1295_v34 = vrot.slane %v1294_v24, 4  ;;  %v1237_v35 = vmul.f32 %v3189_v21, %v1165_v33  ;;  %v1102_v36 = vmul.f32 %v3107_v5, %v953_v22  ;;  %vm1019_vm9 = vcmp.gt.f32.partialorder %v955_v26, 0.0  ;;  %v3197_v37 = vpop.f32.mrb[8].mxu0  ;;  %v3199_v38 = vpop.f32.mrb[8].mxu1 }
 0x15b   : > { %v1309_v39 = vrot.slane %v1308_v28, 4  ;;  %v1301_v40 = vadd.f32 %v1235_v29, %v1231_v49  ;;  %v1104_v41 = vmul.f32 %v3110_v7, %v955_v26  ;;  %vm1018_vm10 = vcmp.gt.f32.partialorder %v954_v27, 0.0  ;;  %v3202_v42 = vpop.f32.mrb[9].mxu0  ;;  %v3204_v43 = vpop.f32.mrb[9].mxu1 }
 0x15c   : > { %v1296_v44 = vadd.f32 %v1295_v34, %v1294_v24  ;;  %v1315_v46 = vadd.f32 %v1237_v35, %v1233_v50  ;;  %v1166_v47 = vsel %vm1017_vm8, %v953_v22, %v1102_v36  ;;  %v1103_v48 = vmul.f32 %v3113_v11, %v954_v27  ;;  %v3207_v51 = vpop.f32.mrb[10].mxu0  ;;  %v3209_v53 = vpop.f32.mrb[10].mxu1 }
 0x15d   : > { %v1310_v55 = vadd.f32 %v1309_v39, %v1308_v28  ;;  %v1302_v59 = vrot.slane %v1301_v40, 4  ;;  %v1168_v49 = vsel %vm1019_vm9, %v955_v26, %v1104_v41  ;;  %v3212_v0 = vpop.f32.mrb[11].mxu0  ;;  %v3214_v6 = vpop.f32.mrb[11].mxu1  ;;  %v1238_v50 = vmul.f32 %v3125_v23, %v1166_v47  ;;  %v2644_v41 = vld [vmem:[#allocation4 + $0xd8] sm:$0xff]  }
 0x15e   : > { %v1297_v9 = vrot.slane %v1296_v44, 2  ;;  %v1316_v10 = vrot.slane %v1315_v46, 4  ;;  %v3218_v15 = vmul.f32 %v3136_v30, %v1168_v49  ;;  %v1167_v19 = vsel %vm1018_vm10, %v954_v27, %v1103_v48  ;;  %v2645_v48 = vld [vmem:[#allocation4 + $0x98] sm:$0xff]   ;;  %2456 = vmatprep.subr.bf16.mxu1 %v2644_v41 }
 0x15f   : > { %v1311_v16 = vrot.slane %v1310_v55, 2  ;;  %v1303_v17 = vadd.f32 %v1302_v59, %v1301_v40  ;;  %v871_v20 = vmul.f32 %v3096_v61, %v3162_v54  ;;  %v872_v25 = vmul.f32 %v3090_v57, %v656_v1  ;;  %2457 = vmatpush3.bf16.msra.mxu1 %v2645_v48 }
 0x160   : > { %v1298_v22 = vadd.f32 %v1297_v9, %v1296_v44  ;;  %v1317_v24 = vadd.f32 %v1316_v10, %v1315_v46  ;;  %v874_v26 = vmul.f32 %v3092_v58, %v769_v4  ;;  %v873_v34 = vmul.f32 %v3094_v60, %v658_v12  ;;  %v2643_v12 = vld [vmem:[#allocation4 + $0x18] sm:$0xff]  }
 0x161   : > { %v1312_v28 = vadd.f32 %v1311_v16, %v1310_v55  ;;  %v1304_v29 = vrot.slane %v1303_v17, 2  ;;  %v956_v33 = vadd.f32 %v3104_v3, %v871_v20  ;;  %v957_v27 = vadd.f32 %v3098_v62, %v872_v25  ;;  %2435 = vmatpush3.bf16.msra.mxu0 %v2643_v12 }
 0x162   : > { %v1299_v35 = vrot.slane %v1298_v22, 1  ;;  %v1318_v36 = vrot.slane %v1317_v24, 2  ;;  %v959_v39 = vadd.f32 %v3100_v63, %v874_v26  ;;  %v3229_v54 = vpop.f32.mrb[12].mxu0  ;;  %v3231_v40 = vpop.f32.mrb[12].mxu1  ;;  %vm1683_vm0 = vcmask 1041409  }
 0x163   : > { %v1313_v1 = vrot.slane %v1312_v28, 1  ;;  %v1305_v44 = vadd.f32 %v1304_v29, %v1303_v17  ;;  %vm1020_vm11 = vcmp.gt.f32.partialorder %v956_v33, 0.0  ;;  %v1105_v4 = vmul.f32 %v3116_v13, %v956_v33  ;;  %v3234_v46 = vpop.f32.mrb[13].mxu0  ;;  %v3236_v47 = vpop.f32.mrb[13].mxu1 }
 0x164   : > { %v1300_v55 = vadd.f32 %v1299_v35, %v1298_v22  ;;  %v1319_v59 = vadd.f32 %v1318_v36, %v1317_v24  ;;  %vm1021_vm12 = vcmp.gt.f32.partialorder %v957_v27, 0.0  ;;  %v1106_v49 = vmul.f32 %v3107_v5, %v957_v27  ;;  %v3239_v8 = vpop.f32.mrb[14].mxu0  ;;  %v3241_v9 = vpop.f32.mrb[14].mxu1 }
 0x165   : > { %v1314_v10 = vadd.f32 %v1313_v1, %v1312_v28  ;;  %v1306_v16 = vrot.slane %v1305_v44, 1  ;;  %v1239_v17 = vmul.f32 %v3141_v31, %v1167_v19  ;;  %v1169_v20 = vsel %vm1020_vm11, %v956_v33, %v1105_v4  ;;  %v3245_v25 = vpop.f32.mrb[15].mxu0  ;;  %v3247_v26 = vpop.f32.mrb[15].mxu1 }
 0x166   : > { %v1518_v22 = vpack.c.bf16 %v1300_v55, %v1300_v55  ;;  %v1320_v24 = vrot.slane %v1319_v59, 1  ;;  %v1170_v29 = vsel %vm1021_vm12, %v957_v27, %v1106_v49  ;;  %vm1023_vm13 = vcmp.gt.f32.partialorder %v959_v39, 0.0 }
 0x167   : > { %v1520_v35 = vpack.c.bf16 %v1314_v10, %v1314_v10  ;;  %v1307_v36 = vadd.f32 %v1306_v16, %v1305_v44  ;;  %v1242_v41 = vmul.f32 %v3160_v52, %v1170_v29  ;;  %v1108_v28 = vmul.f32 %v3110_v7, %v959_v39 }
 0x168   : > { %v3251_v1 = vadd.f32 %v1320_v24, %v1319_v59  ;;  %v1241_v19 = vmul.f32 %v3146_v32, %v1169_v20  ;;  %v958_v33 = vadd.f32 %v3102_v2, %v873_v34  ;;  %v875_v4 = vmul.f32 %v3096_v61, %v3175_v14 }
 0x169   : > { %v3257_v12 = vunpack.c.l.b16 %v1518_v22  ;;  %v1519_v48 = vpack.c.bf16 %v1307_v36, %v1307_v36  ;;  %v1322_v27 = vadd.f32 %v1242_v41, %v1238_v50  ;;  %v1172_v55 = vsel %vm1023_vm13, %v959_v39, %v1108_v28 }
 0x16a   : > { %v3259_v49 = vunpack.c.l.b16 %v1520_v35  ;;  %v1244_v44 = vmul.f32 %v3168_v56, %v1172_v55  ;;  %vm1022_vm14 = vcmp.gt.f32.partialorder %v958_v33, 0.0  ;;  %v1107_v59 = vmul.f32 %v3113_v11, %v958_v33  ;;  %v3263_v10 = vpop.f32.mrb[16].mxu0  ;;  %v3265_v16 = vpop.f32.mrb[16].mxu1 }
 0x16b   : > { %v1521_v34 = vpack.c.bf16 %v3251_v1, %v3251_v1  ;;  %v1323_v14 = vrot.slane %v1322_v27, 4  ;;  %v960_v20 = vadd.f32 %v3104_v3, %v875_v4  ;;  %v876_v50 = vmul.f32 %v3090_v57, %v3197_v37  ;;  %v3272_v39 = vpop.f32.mrb[17].mxu0  ;;  %v3274_v22 = vpop.f32.mrb[17].mxu1 }
 0x16c   : > { %3818 = vst [vmem:[#allocation9_spill] sm:$0xff] %v3274_v22  ;;  %v3276_v24 = vunpack.c.l.b16 %v1519_v48  ;;  %v1336_v29 = vadd.f32 %v1244_v44, %v3218_v15  ;;  %v1171_v35 = vsel %vm1022_vm14, %v958_v33, %v1107_v59  ;;  %v878_v36 = vmul.f32 %v3092_v58, %v3199_v38  ;;  %v3281_v41 = vpop.f32.mrb[18].mxu0  ;;  %v3283_v28 = vpop.f32.mrb[18].mxu1  ;;  %v2646_v44 = vld [vmem:[#allocation4 + $0x60] sm:$0xff]  }
 0x16d   : > { %3820 = vst [vmem:[#allocation11_spill] sm:$0xff] %v3281_v41  ;;  %3821 = vst [vmem:[#allocation12_spill] sm:$0xff] %v3283_v28  ;;  %v1324_v1 = vadd.f32 %v1323_v14, %v1322_v27  ;;  %v1243_v4 = vmul.f32 %v3182_v18, %v1171_v35  ;;  %vm1024_vm15 = vcmp.gt.f32.partialorder %v960_v20, 0.0  ;;  %v1109_v37 = vmul.f32 %v3116_v13, %v960_v20  ;;  %v3287_v55 = vpop.f32.mrb[19].mxu0  ;;  %v3289_v48 = vpop.f32.mrb[19].mxu1  ;;  %v2649_v28 = vld [vmem:[#allocation4 + $0xa0] sm:$0xff]  }
 0x16e   : > { %3819 = vst [vmem:[#allocation10_spill] sm:$0xff] %v3276_v24  ;;  %3822 = vst [vmem:[#allocation13_spill] sm:$0xff] %v3287_v55  ;;  %v1337_v45 = vrot.slane %v1336_v29, 4  ;;  %v961_v15 = vadd.f32 %v3098_v62, %v876_v50  ;;  %v963_v33 = vadd.f32 %v3100_v63, %v878_v36  ;;  %v877_v38 = vmul.f32 %v3094_v60, %v3202_v42  ;;  %v2648_v24 = vld [vmem:[#allocation4 + $0xe0] sm:$0xff]  }
 0x16f   : > { %3823 = vst [vmem:[#allocation14_spill] sm:$0xff] %v3289_v48  ;;  %v1325_v59 = vrot.slane %v1324_v1, 2  ;;  %v1329_v27 = vadd.f32 %v1243_v4, %v1239_v17  ;;  %v1173_v14 = vsel %vm1024_vm15, %v960_v20, %v1109_v37  ;;  %v879_v35 = vmul.f32 %v3096_v61, %v3204_v43  ;;  %2436 = vmatprep.subr.bf16.mxu0 %v2646_v44  ;;  %v2647_v36 = vld [vmem:[#allocation4 + $0x20] sm:$0xff]  }
 0x170   : > { %v1338_v55 = vadd.f32 %v1337_v45, %v1336_v29  ;;  %v1245_v48 = vmul.f32 %v3189_v21, %v1173_v14  ;;  %vm1025_vm1 = vcmp.gt.f32.partialorder %v961_v15, 0.0  ;;  %v1110_v50 = vmul.f32 %v3107_v5, %v961_v15  ;;  %2458 = vmatprep.subr.bf16.mxu1 %v2648_v24  ;;  %2437 = vmatpush3.bf16.msra.mxu0 %v2647_v36 }
 0x171   : > { %v1326_v41 = vadd.f32 %v1325_v59, %v1324_v1  ;;  %v1330_v42 = vrot.slane %v1329_v27, 4  ;;  %vm1027_vm2 = vcmp.gt.f32.partialorder %v963_v33, 0.0  ;;  %v1112_v17 = vmul.f32 %v3110_v7, %v963_v33  ;;  %2459 = vmatpush3.bf16.msra.mxu1 %v2649_v28  ;;  %v2651_v28 = vld [vmem:[#allocation4 + $0x28] sm:$0xff]  }
 0x172   : > { %v1339_v20 = vrot.slane %v1338_v55, 2  ;;  %v1343_v4 = vadd.f32 %v1245_v48, %v1241_v19  ;;  %v1174_v43 = vsel %vm1025_vm1, %v961_v15, %v1110_v50  ;;  %v962_v37 = vadd.f32 %v3102_v2, %v877_v38  ;;  %v3301_v45 = vpop.f32.mrb[20].mxu0  ;;  %v3303_v29 = vpop.f32.mrb[20].mxu1  ;;  %v2650_v19 = vld [vmem:[#allocation4 + $0x68] sm:$0xff]  }
 0x173   : > { %3824 = vst [vmem:[#allocation15_spill] sm:$0xff] %v3303_v29  ;;  %v3305_v44 = vunpack.c.l.b16 %v1521_v34  ;;  %v1327_v14 = vrot.slane %v1326_v41, 1  ;;  %v1331_v1 = vadd.f32 %v1330_v42, %v1329_v27  ;;  %v3308_v59 = vmul.f32 %v3125_v23, %v1174_v43  ;;  %v3310_v22 = vpop.f32.mrb[21].mxu0  ;;  %v3312_v24 = vpop.f32.mrb[21].mxu1  ;;  %v2652_v48 = vld [vmem:[#allocation4 + $0xe8] sm:$0xff]   ;;  %2438 = vmatprep.subr.bf16.mxu0 %v2650_v19  ;;  %v2655_v19 = vld [vmem:[#allocation4 + $0x30] sm:$0xff]  }
 0x174   : > { %3826 = vst [vmem:[#allocation17_spill] sm:$0xff] %v3310_v22  ;;  %3827 = vst [vmem:[#allocation18_spill] sm:$0xff] %v3312_v24  ;;  %v1340_v15 = vadd.f32 %v1339_v20, %v1338_v55  ;;  %v1344_v38 = vrot.slane %v1343_v4, 4  ;;  %v1176_v50 = vsel %vm1027_vm2, %v963_v33, %v1112_v17  ;;  %vm1026_vm3 = vcmp.gt.f32.partialorder %v962_v37, 0.0  ;;  %v3315_v36 = vpop.f32.mrb[22].mxu0  ;;  %v3317_v34 = vpop.f32.mrb[22].mxu1  ;;  %2460 = vmatprep.subr.bf16.mxu1 %v2652_v48 }
 0x175   : > { %3825 = vst [vmem:[#allocation16_spill] sm:$0xff] %v3305_v44  ;;  %3828 = vst [vmem:[#allocation19_spill] sm:$0xff] %v3315_v36  ;;  %v2653_v27 = vld [vmem:[#allocation4 + $0xa8] sm:$0xff]   ;;  %v1328_v42 = vadd.f32 %v1327_v14, %v1326_v41  ;;  %v1332_v43 = vrot.slane %v1331_v1, 2  ;;  %v1111_v44 = vmul.f32 %v3113_v11, %v962_v37  ;;  %v964_v22 = vadd.f32 %v3104_v3, %v879_v35  ;;  %v3321_v24 = vpop.f32.mrb[23].mxu0  ;;  %v3323_v29 = vpop.f32.mrb[23].mxu1 }
 0x176   : > { %3829 = vst [vmem:[#allocation20_spill] sm:$0xff] %v3317_v34  ;;  %3830 = vst [vmem:[#allocation21_spill] sm:$0xff] %v3321_v24  ;;  %v1341_v55 = vrot.slane %v1340_v15, 1  ;;  %v1345_v33 = vadd.f32 %v1344_v38, %v1343_v4  ;;  %v880_v17 = vmul.f32 %v3090_v57, %v3207_v51  ;;  %v882_v20 = vmul.f32 %v3092_v58, %v3209_v53  ;;  %v2656_v48 = vld [vmem:[#allocation4 + $0xf0] sm:$0xff]   ;;  %v2658_v36 = vld [vmem:[#allocation4 + $0x78] sm:$0xff]  }
 0x177   : > { %3831 = vst [vmem:[#allocation22_spill] sm:$0xff] %v3323_v29  ;;  %2439 = vmatpush3.bf16.msra.mxu0 %v2651_v28  ;;  %2461 = vmatpush3.bf16.msra.mxu1 %v2653_v27  ;;  %v1522_v41 = vpack.c.bf16 %v1328_v42, %v1328_v42  ;;  %v1333_v14 = vadd.f32 %v1332_v43, %v1331_v1  ;;  %v2654_v29 = vld [vmem:[#allocation4 + $0x70] sm:$0xff]   ;;  %vm1028_vm4 = vcmp.gt.f32.partialorder %v964_v22, 0.0 }
 0x178   : > { %v3330_v35 = vmul.f32 %v3136_v30, %v1176_v50  ;;  %v1175_v24 = vsel %vm1026_vm3, %v962_v37, %v1111_v44  ;;  %v1342_v34 = vadd.f32 %v1341_v55, %v1340_v15  ;;  %v1346_v4 = vrot.slane %v1345_v33, 2  ;;  %v2657_v38 = vld [vmem:[#allocation4 + $0xb0] sm:$0xff]   ;;  %2440 = vmatprep.subr.bf16.mxu0 %v2654_v29  ;;  %2462 = vmatprep.subr.bf16.mxu1 %v2656_v48  ;;  %v2660_v50 = vld [vmem:[#allocation4 + $0xf8] sm:$0xff]  }
 0x179   : > { %v1113_v51 = vmul.f32 %v3116_v13, %v964_v22  ;;  %v1655_v53 = vunpack.c.l.b16 %v1522_v41  ;;  %v1334_v28 = vrot.slane %v1333_v14, 1  ;;  %v965_v27 = vadd.f32 %v3098_v62, %v880_v17  ;;  %v2659_v41 = vld [vmem:[#allocation4 + $0x38] sm:$0xff]  }
 0x17a   : > { %v967_v1 = vadd.f32 %v3100_v63, %v882_v20  ;;  %v1524_v37 = vpack.c.bf16 %v1342_v34, %v1342_v34  ;;  %v1347_v44 = vadd.f32 %v1346_v4, %v1345_v33  ;;  %v3337_v42 = vmul.f32 %v3141_v31, %v1175_v24  ;;  %v3341_v43 = vpop.f32.mrb[24].mxu0  ;;  %v3343_v55 = vpop.f32.mrb[24].mxu1 }
 0x17b   : > { %v881_v15 = vmul.f32 %v3094_v60, %v3212_v0  ;;  %2441 = vmatpush3.bf16.msra.mxu0 %v2655_v19  ;;  %v3347_v17 = vsel %vm1683_vm0, %v1655_v53, %v3257_v12  ;;  %v1335_v29 = vadd.f32 %v1334_v28, %v1333_v14  ;;  %v1177_v34 = vsel %vm1028_vm4, %v964_v22, %v1113_v51  ;;  %v3350_v33 = vpop.f32.mrb[25].mxu0  ;;  %v3352_v24 = vpop.f32.mrb[25].mxu1  ;;  %v2661_v0 = vld [vmem:[#allocation4 + $0xb8] sm:$0xff]  }
 0x17c   : > { %3832 = vst [vmem:[#allocation23_spill] sm:$0xff] %v3347_v17  ;;  %vm1029_vm5 = vcmp.gt.f32.partialorder %v965_v27, 0.0  ;;  %2463 = vmatpush3.bf16.msra.mxu1 %v2657_v38  ;;  %2442 = vmatprep.subr.bf16.mxu0 %v2658_v36  ;;  %v1657_v20 = vunpack.c.l.b16 %v1524_v37  ;;  %v1348_v48 = vrot.slane %v1347_v44, 1  ;;  %v1114_v19 = vmul.f32 %v3107_v5, %v965_v27  ;;  %v3355_v4 = vpop.f32.mrb[26].mxu0  ;;  %v3357_v12 = vpop.f32.mrb[26].mxu1 }
 0x17d   : > { %vm1031_vm6 = vcmp.gt.f32.partialorder %v967_v1, 0.0  ;;  %2464 = vmatprep.subr.bf16.mxu1 %v2660_v50  ;;  %v1523_v14 = vpack.c.bf16 %v1335_v29, %v1335_v29  ;;  %v1116_v22 = vmul.f32 %v3110_v7, %v967_v1  ;;  %v966_v51 = vadd.f32 %v3102_v2, %v881_v15  ;;  %v3363_v36 = vpop.f32.mrb[27].mxu0  ;;  %v3365_v53 = vpop.f32.mrb[27].mxu1 }
 0x17e   : > { %v883_v38 = vmul.f32 %v3096_v61, %v3214_v6  ;;  %3833 = vst [vmem:[#allocation24_spill] sm:$0xff] %v3365_v53  ;;  %v3369_v28 = vsel %vm1683_vm0, %v1657_v20, %v3259_v49  ;;  %v1349_v37 = vadd.f32 %v1348_v48, %v1347_v44  ;;  %v1178_v17 = vsel %vm1029_vm5, %v965_v27, %v1114_v19 }
 0x17f   : > { %3834 = vst [vmem:[#allocation25_spill] sm:$0xff] %v3369_v28  ;;  %v884_v50 = vmul.f32 %v3090_v57, %v3229_v54  ;;  %2443 = vmatpush3.bf16.msra.mxu0 %v2659_v41  ;;  %v1249_v15 = vmul.f32 %v3146_v32, %v1177_v34  ;;  %v1250_v29 = vmul.f32 %v3160_v52, %v1178_v17  ;;  %vm1030_vm7 = vcmp.gt.f32.partialorder %v966_v51, 0.0 }
 0x180   : > { %v1180_v6 = vsel %vm1031_vm6, %v967_v1, %v1116_v22  ;;  %2465 = vmatpush3.bf16.msra.mxu1 %v2661_v0  ;;  %v3377_v53 = vunpack.c.l.b16 %v1523_v14  ;;  %v1115_v44 = vmul.f32 %v3113_v11, %v966_v51  ;;  %v968_v27 = vadd.f32 %v3104_v3, %v883_v38 }
 0x181   : > { %v1252_v49 = vmul.f32 %v3168_v56, %v1180_v6  ;;  %v1350_v20 = vadd.f32 %v1250_v29, %v3308_v59  ;;  %v969_v54 = vadd.f32 %v3098_v62, %v884_v50  ;;  %v886_v41 = vmul.f32 %v3092_v58, %v3231_v40 }
 0x182   : > { %3835 = vst [vmem:[#allocation26_spill] sm:$0xff] %v3377_v53  ;;  %v885_v1 = vmul.f32 %v3094_v60, %v3234_v46  ;;  %v1525_v17 = vpack.c.bf16 %v1349_v37, %v1349_v37  ;;  %v1179_v0 = vsel %vm1030_vm7, %v966_v51, %v1115_v44  ;;  %vm1032_vm8 = vcmp.gt.f32.partialorder %v968_v27, 0.0  ;;  %v3389_v48 = vpop.f32.mrb[28].mxu0  ;;  %v3391_v19 = vpop.f32.mrb[28].mxu1 }
 0x183   : > { %v1364_v34 = vadd.f32 %v1252_v49, %v3330_v35  ;;  %v1351_v14 = vrot.slane %v1350_v20, 4  ;;  %v1251_v59 = vmul.f32 %v3182_v18, %v1179_v0  ;;  %v1117_v22 = vmul.f32 %v3116_v13, %v968_v27  ;;  %v3395_v38 = vpop.f32.mrb[29].mxu0  ;;  %v3397_v40 = vpop.f32.mrb[29].mxu1 }
 0x184   : > { %vm1033_vm9 = vcmp.gt.f32.partialorder %v969_v54, 0.0  ;;  %3836 = vst [vmem:[#allocation27_spill] sm:$0xff] %v3395_v38  ;;  %3837 = vst [vmem:[#allocation28_spill] sm:$0xff] %v3397_v40  ;;  %v1118_v37 = vmul.f32 %v3107_v5, %v969_v54  ;;  %v971_v35 = vadd.f32 %v3100_v63, %v886_v41  ;;  %v970_v51 = vadd.f32 %v3102_v2, %v885_v1  ;;  %v3402_v50 = vpop.f32.mrb[30].mxu0  ;;  %v3404_v29 = vpop.f32.mrb[30].mxu1 }
 0x185   : > { %v1365_v46 = vrot.slane %v1364_v34, 4  ;;  %3838 = vst [vmem:[#allocation29_spill] sm:$0xff] %v3402_v50  ;;  %3839 = vst [vmem:[#allocation30_spill] sm:$0xff] %v3404_v29  ;;  %v1352_v6 = vadd.f32 %v1351_v14, %v1350_v20  ;;  %v1357_v49 = vadd.f32 %v1251_v59, %v3337_v42  ;;  %v1181_v44 = vsel %vm1032_vm8, %v968_v27, %v1117_v22  ;;  %v3410_v28 = vpop.f32.mrb[31].mxu0  ;;  %v3412_v53 = vpop.f32.mrb[31].mxu1 }
 0x186   : > { %v887_v0 = vmul.f32 %v3096_v61, %v3236_v47  ;;  %3840 = vst [vmem:[#allocation31_spill] sm:$0xff] %v3410_v28  ;;  %3841 = vst [vmem:[#allocation32_spill] sm:$0xff] %v3412_v53  ;;  %v3414_v40 = vunpack.c.l.b16 %v1525_v17  ;;  %v1253_v1 = vmul.f32 %v3189_v21, %v1181_v44  ;;  %vm1035_vm10 = vcmp.gt.f32.partialorder %v971_v35, 0.0 }
 0x187   : > { %v1366_v41 = vadd.f32 %v1365_v46, %v1364_v34  ;;  %v1353_v50 = vrot.slane %v1352_v6, 2  ;;  %v1358_v29 = vrot.slane %v1357_v49, 4  ;;  %v1182_v20 = vsel %vm1033_vm9, %v969_v54, %v1118_v37 }
 0x188   : > { %3842 = vst [vmem:[#allocation33_spill] sm:$0xff] %v3414_v40  ;;  %v1120_v42 = vmul.f32 %v3110_v7, %v971_v35  ;;  %v1371_v14 = vadd.f32 %v1253_v1, %v1249_v15  ;;  %vm1034_vm11 = vcmp.gt.f32.partialorder %v970_v51, 0.0  ;;  %v1119_v47 = vmul.f32 %v3113_v11, %v970_v51 }
 0x189   : > { %v1367_v27 = vrot.slane %v1366_v41, 2  ;;  %v1354_v59 = vadd.f32 %v1353_v50, %v1352_v6  ;;  %v1359_v22 = vadd.f32 %v1358_v29, %v1357_v49  ;;  %v972_v17 = vadd.f32 %v3104_v3, %v887_v0 }
 0x18a   : > { %v1184_v53 = vsel %vm1035_vm10, %v971_v35, %v1120_v42  ;;  %v1372_v46 = vrot.slane %v1371_v14, 4  ;;  %v1254_v44 = vmul.f32 %v3125_v23, %v1182_v20  ;;  %v1183_v37 = vsel %vm1034_vm11, %v970_v51, %v1119_v47 }
 0x18b   : > { %v1368_v34 = vadd.f32 %v1367_v27, %v1366_v41  ;;  %v1256_v40 = vmul.f32 %v3136_v30, %v1184_v53  ;;  %v1355_v28 = vrot.slane %v1354_v59, 1  ;;  %v1360_v54 = vrot.slane %v1359_v22, 2 }
 0x18c   : > { %vm1036_vm12 = vcmp.gt.f32.partialorder %v972_v17, 0.0  ;;  %v1373_v15 = vadd.f32 %v1372_v46, %v1371_v14  ;;  %v1121_v1 = vmul.f32 %v3116_v13, %v972_v17  ;;  %v888_v50 = vmul.f32 %v3090_v57, %v3239_v8 }
 0x18d   : > { %v1369_v38 = vrot.slane %v1368_v34, 1  ;;  %v1356_v35 = vadd.f32 %v1355_v28, %v1354_v59  ;;  %v1361_v29 = vadd.f32 %v1360_v54, %v1359_v22  ;;  %v890_v6 = vmul.f32 %v3092_v58, %v3241_v9 }
 0x18e   : > { %v889_v49 = vmul.f32 %v3094_v60, %v3245_v25  ;;  %v1374_v0 = vrot.slane %v1373_v15, 2  ;;  %v1185_v41 = vsel %vm1036_vm12, %v972_v17, %v1121_v1  ;;  %v973_v51 = vadd.f32 %v3098_v62, %v888_v50 }
 0x18f   : > { %v1370_v53 = vadd.f32 %v1369_v38, %v1368_v34  ;;  %v1526_v20 = vpack.c.bf16 %v1356_v35, %v1356_v35  ;;  %v1362_v42 = vrot.slane %v1361_v29, 1  ;;  %v1255_v27 = vmul.f32 %v3141_v31, %v1183_v37 }
 0x190   : > { %v975_v14 = vadd.f32 %v3100_v63, %v890_v6  ;;  %v1375_v8 = vadd.f32 %v1374_v0, %v1373_v15  ;;  %v1257_v28 = vmul.f32 %v3146_v32, %v1185_v41  ;;  %vm1037_vm13 = vcmp.gt.f32.partialorder %v973_v51, 0.0 }
 0x191   : > { %v1122_v9 = vmul.f32 %v3107_v5, %v973_v51  ;;  %v1528_v47 = vpack.c.bf16 %v1370_v53, %v1370_v53  ;;  %v1363_v59 = vadd.f32 %v1362_v42, %v1361_v29  ;;  %v3436_v38 = vunpack.c.l.b16 %v1526_v20 }
 0x192   : > { %vm1039_vm14 = vcmp.gt.f32.partialorder %v975_v14, 0.0  ;;  %v1124_v25 = vmul.f32 %v3110_v7, %v975_v14  ;;  %v1376_v22 = vrot.slane %v1375_v8, 1  ;;  %v974_v34 = vadd.f32 %v3102_v2, %v889_v49 }
 0x193   : > { %v1186_v17 = vsel %vm1037_vm13, %v973_v51, %v1122_v9  ;;  %v1527_v46 = vpack.c.bf16 %v1363_v59, %v1363_v59  ;;  %v891_v15 = vmul.f32 %v3096_v61, %v3247_v26  ;;  %v3444_v29 = vunpack.c.l.b16 %v1528_v47 }
 0x194   : > { %v1258_v54 = vmul.f32 %v3160_v52, %v1186_v17  ;;  %v1188_v37 = vsel %vm1039_vm14, %v975_v14, %v1124_v25  ;;  %v1377_v1 = vadd.f32 %v1376_v22, %v1375_v8  ;;  %vm1038_vm15 = vcmp.gt.f32.partialorder %v974_v34, 0.0 }
 0x195   : > { %v1260_v50 = vmul.f32 %v3168_v56, %v1188_v37  ;;  %v1123_v35 = vmul.f32 %v3113_v11, %v974_v34  ;;  %v976_v53 = vadd.f32 %v3104_v3, %v891_v15  ;;  %v892_v49 = vmul.f32 %v3090_v57, %v3263_v10 }
 0x196   : > { %v1378_v6 = vadd.f32 %v1258_v54, %v1254_v44  ;;  %v3449_v0 = vunpack.c.l.b16 %v1527_v46  ;;  %v894_v26 = vmul.f32 %v3092_v58, %v3265_v16  ;;  %v1529_v8 = vpack.c.bf16 %v1377_v1, %v1377_v1 }
 0x197   : > { %v1392_v41 = vadd.f32 %v1260_v50, %v1256_v40  ;;  %v1187_v51 = vsel %vm1038_vm15, %v974_v34, %v1123_v35  ;;  %vm1040_vm1 = vcmp.gt.f32.partialorder %v976_v53, 0.0  ;;  %v1125_v14 = vmul.f32 %v3116_v13, %v976_v53 }
 0x198   : > { %v1379_v20 = vrot.slane %v1378_v6, 4  ;;  %v1259_v42 = vmul.f32 %v3182_v18, %v1187_v51  ;;  %v977_v9 = vadd.f32 %v3098_v62, %v892_v49  ;;  %v979_v47 = vadd.f32 %v3100_v63, %v894_v26 }
 0x199   : > { %v1393_v44 = vrot.slane %v1392_v41, 4  ;;  %v1189_v25 = vsel %vm1040_vm1, %v976_v53, %v1125_v14  ;;  %v893_v40 = vmul.f32 %v3094_v60, %v3272_v39  ;;  %v3463_v50 = vunpack.c.l.b16 %v1529_v8 }
 0x19a   : > { %v1380_v10 = vadd.f32 %v1379_v20, %v1378_v6  ;;  %v1385_v59 = vadd.f32 %v1259_v42, %v1255_v27  ;;  %v1261_v16 = vmul.f32 %v3189_v21, %v1189_v25  ;;  %vm1041_vm2 = vcmp.gt.f32.partialorder %v977_v9, 0.0  ;;  %v3843_v42 = vld [vmem:[#allocation9_spill] sm:$0xff] }
 0x19b   : > { %v1394_v22 = vadd.f32 %v1393_v44, %v1392_v41  ;;  %v1126_v17 = vmul.f32 %v3107_v5, %v977_v9  ;;  %vm1043_vm3 = vcmp.gt.f32.partialorder %v979_v47, 0.0  ;;  %v1128_v54 = vmul.f32 %v3110_v7, %v979_v47 }
 0x19c   : > { %v1381_v34 = vrot.slane %v1380_v10, 2  ;;  %v1386_v46 = vrot.slane %v1385_v59, 4  ;;  %v1399_v15 = vadd.f32 %v1261_v16, %v1257_v28  ;;  %v978_v27 = vadd.f32 %v3102_v2, %v893_v40 }
 0x19d   : > { %v1395_v37 = vrot.slane %v1394_v22, 2  ;;  %v1190_v1 = vsel %vm1041_vm2, %v977_v9, %v1126_v17  ;;  %v1192_v6 = vsel %vm1043_vm3, %v979_v47, %v1128_v54  ;;  %v895_v28 = vmul.f32 %v3096_v61, %v3843_v42  ;;  %v3844_v9 = vld [vmem:[#allocation11_spill] sm:$0xff] }
 0x19e   : > { %v1382_v35 = vadd.f32 %v1381_v34, %v1380_v10  ;;  %v1387_v39 = vadd.f32 %v1386_v46, %v1385_v59  ;;  %v1400_v49 = vrot.slane %v1399_v15, 4  ;;  %v1262_v41 = vmul.f32 %v3125_v23, %v1190_v1  ;;  %v3845_v23 = vld [vmem:[#allocation12_spill] sm:$0xff] }
 0x19f   : > { %v1396_v53 = vadd.f32 %v1395_v37, %v1394_v22  ;;  %vm1042_vm4 = vcmp.gt.f32.partialorder %v978_v27, 0.0  ;;  %v1127_v20 = vmul.f32 %v3113_v11, %v978_v27  ;;  %v1264_v8 = vmul.f32 %v3136_v30, %v1192_v6 }
 0x1a0   : > { %v1383_v51 = vrot.slane %v1382_v35, 1  ;;  %v1388_v26 = vrot.slane %v1387_v39, 2  ;;  %v1401_v44 = vadd.f32 %v1400_v49, %v1399_v15  ;;  %v896_v10 = vmul.f32 %v3090_v57, %v3844_v9 }
 0x1a1   : > { %v1397_v14 = vrot.slane %v1396_v53, 1  ;;  %v980_v25 = vadd.f32 %v3104_v3, %v895_v28  ;;  %v898_v40 = vmul.f32 %v3092_v58, %v3845_v23  ;;  %v1191_v17 = vsel %vm1042_vm4, %v978_v27, %v1127_v20 }
 0x1a2   : > { %v1384_v47 = vadd.f32 %v1383_v51, %v1382_v35  ;;  %v1389_v59 = vadd.f32 %v1388_v26, %v1387_v39  ;;  %v1402_v16 = vrot.slane %v1401_v44, 2  ;;  %v981_v34 = vadd.f32 %v3098_v62, %v896_v10  ;;  %v3847_v10 = vld [vmem:[#allocation14_spill] sm:$0xff] }
 0x1a3   : > { %v1398_v22 = vadd.f32 %v1397_v14, %v1396_v53  ;;  %vm1044_vm5 = vcmp.gt.f32.partialorder %v980_v25, 0.0  ;;  %v1129_v30 = vmul.f32 %v3116_v13, %v980_v25  ;;  %v1263_v6 = vmul.f32 %v3141_v31, %v1191_v17 }
 0x1a4   : > { %v1530_v46 = vpack.c.bf16 %v1384_v47, %v1384_v47  ;;  %v1390_v54 = vrot.slane %v1389_v59, 1  ;;  %v1403_v15 = vadd.f32 %v1402_v16, %v1401_v44  ;;  %vm1045_vm6 = vcmp.gt.f32.partialorder %v981_v34, 0.0  ;;  %v3846_v44 = vld [vmem:[#allocation13_spill] sm:$0xff] }
 0x1a5   : > { %v1532_v37 = vpack.c.bf16 %v1398_v22, %v1398_v22  ;;  %v1130_v1 = vmul.f32 %v3107_v5, %v981_v34  ;;  %v983_v53 = vadd.f32 %v3100_v63, %v898_v40  ;;  %v1193_v51 = vsel %vm1044_vm5, %v980_v25, %v1129_v30  ;;  %v3848_v40 = vld [vmem:[#allocation15_spill] sm:$0xff] }
 0x1a6   : > { %v3478_v35 = vunpack.c.l.b16 %v1530_v46  ;;  %v1391_v39 = vadd.f32 %v1390_v54, %v1389_v59  ;;  %v1404_v49 = vrot.slane %v1403_v15, 1  ;;  %v897_v9 = vmul.f32 %v3094_v60, %v3846_v44 }
 0x1a7   : > { %v3482_v27 = vunpack.c.l.b16 %v1532_v37  ;;  %v1194_v26 = vsel %vm1045_vm6, %v981_v34, %v1130_v1  ;;  %vm1047_vm7 = vcmp.gt.f32.partialorder %v983_v53, 0.0  ;;  %v1132_v28 = vmul.f32 %v3110_v7, %v983_v53  ;;  %v3849_v37 = vld [vmem:[#allocation17_spill] sm:$0xff] }
 0x1a8   : > { %v1531_v20 = vpack.c.bf16 %v1391_v39, %v1391_v39  ;;  %v1266_v42 = vmul.f32 %v3160_v52, %v1194_v26  ;;  %v1405_v14 = vadd.f32 %v1404_v49, %v1403_v15  ;;  %v899_v31 = vmul.f32 %v3096_v61, %v3847_v10 }
 0x1a9   : > { %v900_v47 = vmul.f32 %v3090_v57, %v3301_v45  ;;  %v1265_v59 = vmul.f32 %v3146_v32, %v1193_v51  ;;  %v1196_v23 = vsel %vm1047_vm7, %v983_v53, %v1132_v28  ;;  %v902_v52 = vmul.f32 %v3092_v58, %v3848_v40 }
 0x1aa   : > { %v1406_v25 = vadd.f32 %v1266_v42, %v1262_v41  ;;  %v3495_v22 = vunpack.c.l.b16 %v1531_v20  ;;  %v1268_v16 = vmul.f32 %v3168_v56, %v1196_v23  ;;  %v982_v17 = vadd.f32 %v3102_v2, %v897_v9 }
 0x1ab   : > { %v984_v34 = vadd.f32 %v3104_v3, %v899_v31  ;;  %v1533_v46 = vpack.c.bf16 %v1405_v14, %v1405_v14  ;;  %v985_v30 = vadd.f32 %v3098_v62, %v900_v47  ;;  %v987_v45 = vadd.f32 %v3100_v63, %v902_v52 }
 0x1ac   : > { %v1407_v54 = vrot.slane %v1406_v25, 4  ;;  %v1420_v32 = vadd.f32 %v1268_v16, %v1264_v8  ;;  %vm1046_vm8 = vcmp.gt.f32.partialorder %v982_v17, 0.0  ;;  %v1131_v41 = vmul.f32 %v3113_v11, %v982_v17 }
 0x1ad   : > { %v901_v15 = vmul.f32 %v3094_v60, %v3849_v37  ;;  %vm1048_vm9 = vcmp.gt.f32.partialorder %v984_v34, 0.0  ;;  %v1133_v56 = vmul.f32 %v3116_v13, %v984_v34  ;;  %vm1049_vm10 = vcmp.gt.f32.partialorder %v985_v30, 0.0 }
 0x1ae   : > { %v1408_v1 = vadd.f32 %v1407_v54, %v1406_v25  ;;  %v1421_v39 = vrot.slane %v1420_v32, 4  ;;  %v1195_v53 = vsel %vm1046_vm8, %v982_v17, %v1131_v41  ;;  %v1134_v49 = vmul.f32 %v3107_v5, %v985_v30  ;;  %v3850_v17 = vld [vmem:[#allocation18_spill] sm:$0xff] }
 0x1af   : > { %vm1051_vm11 = vcmp.gt.f32.partialorder %v987_v45, 0.0  ;;  %v1267_v26 = vmul.f32 %v3182_v18, %v1195_v53  ;;  %v1197_v8 = vsel %vm1048_vm9, %v984_v34, %v1133_v56  ;;  %v1136_v20 = vmul.f32 %v3110_v7, %v987_v45  ;;  %v3516_v18 = vld [vmem:[%s3808_s3] sm:$0xff] }
 0x1b0   : > { %v1409_v51 = vrot.slane %v1408_v1, 2  ;;  %v1422_v42 = vadd.f32 %v1421_v39, %v1420_v32  ;;  %v1269_v28 = vmul.f32 %v3189_v21, %v1197_v8  ;;  %v1198_v14 = vsel %vm1049_vm10, %v985_v30, %v1134_v49  ;;  %v3851_v30 = vld [vmem:[#allocation19_spill] sm:$0xff] }
 0x1b1   : > { %v986_v44 = vadd.f32 %v3102_v2, %v901_v15  ;;  %v3511_v9 = vunpack.c.l.b16 %v1533_v46  ;;  %v1413_v31 = vadd.f32 %v1267_v26, %v1263_v6  ;;  %v1200_v47 = vsel %vm1051_vm11, %v987_v45, %v1136_v20  ;;  %v3852_v15 = vld [vmem:[#allocation20_spill] sm:$0xff] }
 0x1b2   : > { %v1410_v10 = vadd.f32 %v1409_v51, %v1408_v1  ;;  %v1423_v25 = vrot.slane %v1422_v42, 2  ;;  %v1427_v23 = vadd.f32 %v1269_v28, %v1265_v59  ;;  %v1270_v40 = vmul.f32 %v3516_v18, %v1198_v14  ;;  %v3525_v59 = vld [vmem:[%s3808_s3 + $0x10] sm:$0xff] }
 0x1b3   : > { %vm1050_vm12 = vcmp.gt.f32.partialorder %v986_v44, 0.0  ;;  %v1414_v21 = vrot.slane %v1413_v31, 4  ;;  %v1135_v16 = vmul.f32 %v3113_v11, %v986_v44  ;;  %v903_v34 = vmul.f32 %v3096_v61, %v3850_v17  ;;  %v3549_v17 = vld [vmem:[%s3808_s3 + $0x20] sm:$0xff] }
 0x1b4   : > { %v1411_v52 = vrot.slane %v1410_v10, 1  ;;  %v1424_v46 = vadd.f32 %v1423_v25, %v1422_v42  ;;  %v1428_v6 = vrot.slane %v1427_v23, 4  ;;  %v1272_v54 = vmul.f32 %v3525_v59, %v1200_v47 }
 0x1b5   : > { %v904_v45 = vmul.f32 %v3090_v57, %v3851_v30  ;;  %v1415_v41 = vadd.f32 %v1414_v21, %v1413_v31  ;;  %v988_v37 = vadd.f32 %v3104_v3, %v903_v34  ;;  %v906_v1 = vmul.f32 %v3092_v58, %v3852_v15  ;;  %v3558_v30 = vld [vmem:[%s3808_s3 + $0x18] sm:$0xff] }
 0x1b6   : > { %v1412_v32 = vadd.f32 %v1411_v52, %v1410_v10  ;;  %v1425_v56 = vrot.slane %v1424_v46, 1  ;;  %v1429_v39 = vadd.f32 %v1428_v6, %v1427_v23  ;;  %v1199_v53 = vsel %vm1050_vm12, %v986_v44, %v1135_v16  ;;  %v3540_v10 = vld [vmem:[%s3808_s3 + $0x8] sm:$0xff] }
 0x1b7   : > { %v989_v49 = vadd.f32 %v3098_v62, %v904_v45  ;;  %v1416_v26 = vrot.slane %v1415_v41, 2  ;;  %vm1052_vm13 = vcmp.gt.f32.partialorder %v988_v37, 0.0  ;;  %v1137_v8 = vmul.f32 %v3116_v13, %v988_v37 }
 0x1b8   : > { %v1534_v51 = vpack.c.bf16 %v1412_v32, %v1412_v32  ;;  %v1426_v20 = vadd.f32 %v1425_v56, %v1424_v46  ;;  %v1430_v42 = vrot.slane %v1429_v39, 2  ;;  %v1271_v44 = vmul.f32 %v3540_v10, %v1199_v53  ;;  %v3854_v32 = vld [vmem:[#allocation21_spill] sm:$0xff] }
 0x1b9   : > { %vm1053_vm14 = vcmp.gt.f32.partialorder %v989_v49, 0.0  ;;  %v1138_v28 = vmul.f32 %v3107_v5, %v989_v49  ;;  %v1417_v14 = vadd.f32 %v1416_v26, %v1415_v41  ;;  %v1201_v31 = vsel %vm1052_vm13, %v988_v37, %v1137_v8  ;;  %v3855_v37 = vld [vmem:[#allocation22_spill] sm:$0xff] }
 0x1ba   : > { %v991_v47 = vadd.f32 %v3100_v63, %v906_v1  ;;  %v3544_v25 = vunpack.c.l.b16 %v1534_v51  ;;  %v1536_v23 = vpack.c.bf16 %v1426_v20, %v1426_v20  ;;  %v1431_v52 = vadd.f32 %v1430_v42, %v1429_v39  ;;  %v3572_v51 = vld [vmem:[%s3808_s3 + $0x30] sm:$0xff] }
 0x1bb   : > { %v1202_v21 = vsel %vm1053_vm14, %v989_v49, %v1138_v28  ;;  %v1418_v16 = vrot.slane %v1417_v14, 1  ;;  %v1273_v45 = vmul.f32 %v3558_v30, %v1201_v31  ;;  %v905_v41 = vmul.f32 %v3094_v60, %v3854_v32 }
 0x1bc   : > { %v1274_v34 = vmul.f32 %v3549_v17, %v1202_v21  ;;  %vm1055_vm15 = vcmp.gt.f32.partialorder %v991_v47, 0.0  ;;  %v1140_v46 = vmul.f32 %v3110_v7, %v991_v47  ;;  %v3553_v6 = vunpack.c.l.b16 %v1536_v23 }
 0x1bd   : > { %v907_v15 = vmul.f32 %v3096_v61, %v3855_v37  ;;  %v1432_v1 = vrot.slane %v1431_v52, 1  ;;  %v908_v53 = vmul.f32 %v3090_v57, %v3341_v43  ;;  %v3567_v49 = vadd.f32 %v1418_v16, %v1417_v14 }
 0x1be   : > { %3853 = vst [vmem:[#allocation9_spill] sm:$0xff] %v3553_v6  ;;  %v1434_v56 = vadd.f32 %v1274_v34, %v1270_v40  ;;  %v1204_v39 = vsel %vm1055_vm15, %v991_v47, %v1140_v46  ;;  %v990_v8 = vadd.f32 %v3102_v2, %v905_v41  ;;  %v910_v28 = vmul.f32 %v3092_v58, %v3343_v55  ;;  %v3860_v6 = vld [vmem:[#allocation29_spill] sm:$0xff] }
 0x1bf   : > { %v1276_v26 = vmul.f32 %v3572_v51, %v1204_v39  ;;  %v992_v20 = vadd.f32 %v3104_v3, %v907_v15  ;;  %v993_v40 = vadd.f32 %v3098_v62, %v908_v53  ;;  %v909_v43 = vmul.f32 %v3094_v60, %v3350_v33 }
 0x1c0   : > { %v1435_v42 = vrot.slane %v1434_v56, 4  ;;  %vm1054_vm1 = vcmp.gt.f32.partialorder %v990_v8, 0.0  ;;  %v1139_v31 = vmul.f32 %v3113_v11, %v990_v8  ;;  %v995_v46 = vadd.f32 %v3100_v63, %v910_v28 }
 0x1c1   : > { %v1448_v14 = vadd.f32 %v1276_v26, %v1272_v54  ;;  %vm1056_vm2 = vcmp.gt.f32.partialorder %v992_v20, 0.0  ;;  %v1141_v23 = vmul.f32 %v3116_v13, %v992_v20  ;;  %vm1057_vm3 = vcmp.gt.f32.partialorder %v993_v40, 0.0  ;;  %v3592_v54 = vld [vmem:[%s3808_s3 + $0x28] sm:$0xff] }
 0x1c2   : > { %v1436_v47 = vadd.f32 %v1435_v42, %v1434_v56  ;;  %v1142_v21 = vmul.f32 %v3107_v5, %v993_v40  ;;  %v1203_v34 = vsel %vm1054_vm1, %v990_v8, %v1139_v31  ;;  %v994_v55 = vadd.f32 %v3102_v2, %v909_v43  ;;  %v3598_v56 = vld [vmem:[%s3808_s3 + $0x38] sm:$0xff] }
 0x1c3   : > { %v1449_v16 = vrot.slane %v1448_v14, 4  ;;  %v3587_v32 = vadd.f32 %v1432_v1, %v1431_v52  ;;  %v1275_v41 = vmul.f32 %v3592_v54, %v1203_v34  ;;  %v1205_v37 = vsel %vm1056_vm2, %v992_v20, %v1141_v23 }
 0x1c4   : > { %v1437_v33 = vrot.slane %v1436_v47, 2  ;;  %v1277_v39 = vmul.f32 %v3598_v56, %v1205_v37  ;;  %v1206_v53 = vsel %vm1057_vm3, %v993_v40, %v1142_v21  ;;  %vm1059_vm4 = vcmp.gt.f32.partialorder %v995_v46, 0.0 }
 0x1c5   : > { %v1450_v15 = vadd.f32 %v1449_v16, %v1448_v14  ;;  %v1441_v1 = vadd.f32 %v1275_v41, %v1271_v44  ;;  %v1144_v26 = vmul.f32 %v3110_v7, %v995_v46  ;;  %vm1058_vm5 = vcmp.gt.f32.partialorder %v994_v55, 0.0 }
 0x1c6   : > { %v1438_v52 = vadd.f32 %v1437_v33, %v1436_v47  ;;  %v1455_v42 = vadd.f32 %v1277_v39, %v1273_v45  ;;  %v1143_v28 = vmul.f32 %v3113_v11, %v994_v55  ;;  %v911_v20 = vmul.f32 %v3096_v61, %v3352_v24 }
 0x1c7   : > { %v1451_v8 = vrot.slane %v1450_v15, 2  ;;  %v1442_v14 = vrot.slane %v1441_v1, 4  ;;  %v1208_v31 = vsel %vm1059_vm4, %v995_v46, %v1144_v26  ;;  %v912_v23 = vmul.f32 %v3090_v57, %v3355_v4 }
 0x1c8   : > { %v1439_v43 = vrot.slane %v1438_v52, 1  ;;  %v1456_v21 = vrot.slane %v1455_v42, 4  ;;  %v1278_v44 = vmul.f32 %v3516_v18, %v1206_v53  ;;  %v1280_v47 = vmul.f32 %v3525_v59, %v1208_v31 }
 0x1c9   : > { %v1452_v40 = vadd.f32 %v1451_v8, %v1450_v15  ;;  %v1443_v34 = vadd.f32 %v1442_v14, %v1441_v1  ;;  %v1207_v45 = vsel %vm1058_vm5, %v994_v55, %v1143_v28  ;;  %v996_v33 = vadd.f32 %v3104_v3, %v911_v20 }
 0x1ca   : > { %v1440_v16 = vadd.f32 %v1439_v43, %v1438_v52  ;;  %v1457_v37 = vadd.f32 %v1456_v21, %v1455_v42  ;;  %v997_v24 = vadd.f32 %v3098_v62, %v912_v23  ;;  %v914_v46 = vmul.f32 %v3092_v58, %v3357_v12 }
 0x1cb   : > { %v1453_v41 = vrot.slane %v1452_v40, 1  ;;  %v1444_v4 = vrot.slane %v1443_v34, 2  ;;  %vm1060_vm6 = vcmp.gt.f32.partialorder %v996_v33, 0.0  ;;  %v1145_v15 = vmul.f32 %v3116_v13, %v996_v33 }
 0x1cc   : > { %v1538_v39 = vpack.c.bf16 %v1440_v16, %v1440_v16  ;;  %v1458_v26 = vrot.slane %v1457_v37, 2  ;;  %vm1061_vm7 = vcmp.gt.f32.partialorder %v997_v24, 0.0  ;;  %v1146_v52 = vmul.f32 %v3107_v5, %v997_v24 }
 0x1cd   : > { %v1454_v53 = vadd.f32 %v1453_v41, %v1452_v40  ;;  %v3615_v55 = vadd.f32 %v1444_v4, %v1443_v34  ;;  %v1279_v1 = vmul.f32 %v3540_v10, %v1207_v45  ;;  %v1209_v8 = vsel %vm1060_vm6, %v996_v33, %v1145_v15  ;;  %v3857_v34 = vld [vmem:[#allocation24_spill] sm:$0xff]  ;;  %v3858_v15 = vld [vmem:[#allocation27_spill] sm:$0xff] }
 0x1ce   : > { %v999_v42 = vadd.f32 %v3100_v63, %v914_v46  ;;  %v3619_v28 = vunpack.c.l.b16 %v1538_v39  ;;  %v3621_v20 = vadd.f32 %v1458_v26, %v1457_v37  ;;  %v1210_v43 = vsel %vm1061_vm7, %v997_v24, %v1146_v52  ;;  %v3859_v52 = vld [vmem:[#allocation28_spill] sm:$0xff] }
 0x1cf   : > { %v1540_v12 = vpack.c.bf16 %v1454_v53, %v1454_v53  ;;  %v1281_v14 = vmul.f32 %v3558_v30, %v1209_v8  ;;  %v1282_v31 = vmul.f32 %v3549_v17, %v1210_v43  ;;  %v913_v16 = vmul.f32 %v3094_v60, %v3363_v36 }
 0x1d0   : > { %vm1063_vm8 = vcmp.gt.f32.partialorder %v999_v42, 0.0  ;;  %v1148_v23 = vmul.f32 %v3110_v7, %v999_v42  ;;  %v915_v45 = vmul.f32 %v3096_v61, %v3857_v34  ;;  %v916_v37 = vmul.f32 %v3090_v57, %v3389_v48 }
 0x1d1   : > { %v3626_v40 = vunpack.c.l.b16 %v1540_v12  ;;  %v1462_v33 = vadd.f32 %v1282_v31, %v1278_v44  ;;  %v918_v24 = vmul.f32 %v3092_v58, %v3391_v19  ;;  %v998_v39 = vadd.f32 %v3102_v2, %v913_v16 }
 0x1d2   : > { %v1212_v41 = vsel %vm1063_vm8, %v999_v42, %v1148_v23  ;;  %v1000_v4 = vadd.f32 %v3104_v3, %v915_v45  ;;  %v917_v36 = vmul.f32 %v3094_v60, %v3858_v15  ;;  %v1001_v26 = vadd.f32 %v3098_v62, %v916_v37 }
 0x1d3   : > { %3856 = vst [vmem:[#allocation11_spill] sm:$0xff] %v3626_v40  ;;  %v1284_v46 = vmul.f32 %v3572_v51, %v1212_v41  ;;  %v1463_v53 = vrot.slane %v1462_v33, 4  ;;  %v1003_v44 = vadd.f32 %v3100_v63, %v918_v24  ;;  %v919_v48 = vmul.f32 %v3096_v61, %v3859_v52 }
 0x1d4   : > { %vm1062_vm9 = vcmp.gt.f32.partialorder %v998_v39, 0.0  ;;  %v1147_v19 = vmul.f32 %v3113_v11, %v998_v39  ;;  %vm1064_vm10 = vcmp.gt.f32.partialorder %v1000_v4, 0.0  ;;  %v1149_v12 = vmul.f32 %v3116_v13, %v1000_v4 }
 0x1d5   : > { %v1476_v8 = vadd.f32 %v1284_v46, %v1280_v47  ;;  %v1464_v42 = vadd.f32 %v1463_v53, %v1462_v33  ;;  %vm1065_vm11 = vcmp.gt.f32.partialorder %v1001_v26, 0.0  ;;  %v1150_v43 = vmul.f32 %v3107_v5, %v1001_v26 }
 0x1d6   : > { %v1211_v23 = vsel %vm1062_vm9, %v998_v39, %v1147_v19  ;;  %vm1067_vm12 = vcmp.gt.f32.partialorder %v1003_v44, 0.0  ;;  %v1152_v16 = vmul.f32 %v3110_v7, %v1003_v44  ;;  %v1213_v41 = vsel %vm1064_vm10, %v1000_v4, %v1149_v12 }
 0x1d7   : > { %v1477_v31 = vrot.slane %v1476_v8, 4  ;;  %v1465_v34 = vrot.slane %v1464_v42, 2  ;;  %v1283_v45 = vmul.f32 %v3592_v54, %v1211_v23  ;;  %v1214_v47 = vsel %vm1065_vm11, %v1001_v26, %v1150_v43 }
 0x1d8   : > { %v1460_v37 = vrot.slane %v3621_v20, 1  ;;  %v1285_v33 = vmul.f32 %v3598_v56, %v1213_v41  ;;  %v1286_v46 = vmul.f32 %v3516_v18, %v1214_v47  ;;  %v1216_v52 = vsel %vm1067_vm12, %v1003_v44, %v1152_v16 }
 0x1d9   : > { %v1478_v24 = vadd.f32 %v1477_v31, %v1476_v8  ;;  %v1466_v15 = vadd.f32 %v1465_v34, %v1464_v42  ;;  %v1469_v53 = vadd.f32 %v1283_v45, %v1279_v1  ;;  %v1002_v39 = vadd.f32 %v3102_v2, %v917_v36 }
 0x1da   : > { %v1483_v21 = vadd.f32 %v1285_v33, %v1281_v14  ;;  %v1004_v40 = vadd.f32 %v3104_v3, %v919_v48  ;;  %v920_v4 = vmul.f32 %v3090_v57, %v3860_v6  ;;  %v1288_v57 = vmul.f32 %v3525_v59, %v1216_v52 }
 0x1db   : > { %v1479_v19 = vrot.slane %v1478_v24, 2  ;;  %v1467_v26 = vrot.slane %v1466_v15, 1  ;;  %v1470_v12 = vrot.slane %v1469_v53, 4  ;;  %vm1066_vm13 = vcmp.gt.f32.partialorder %v1002_v39, 0.0 }
 0x1dc   : > { %v1151_v8 = vmul.f32 %v3113_v11, %v1002_v39  ;;  %v1484_v31 = vrot.slane %v1483_v21, 4  ;;  %vm1068_vm14 = vcmp.gt.f32.partialorder %v1004_v40, 0.0  ;;  %v1153_v18 = vmul.f32 %v3116_v13, %v1004_v40 }
 0x1dd   : > { %v1480_v43 = vadd.f32 %v1479_v19, %v1478_v24  ;;  %v1468_v1 = vadd.f32 %v1467_v26, %v1466_v15  ;;  %v1471_v44 = vadd.f32 %v1470_v12, %v1469_v53  ;;  %v1005_v14 = vadd.f32 %v3098_v62, %v920_v4  ;;  %v3861_v24 = vld [vmem:[#allocation30_spill] sm:$0xff]  ;;  %v3862_v15 = vld [vmem:[#allocation31_spill] sm:$0xff] }
 0x1de   : > { %v1215_v36 = vsel %vm1066_vm13, %v1002_v39, %v1151_v8  ;;  %v3661_v48 = vadd.f32 %v1484_v31, %v1483_v21  ;;  %v1217_v6 = vsel %vm1068_vm14, %v1004_v40, %v1153_v18  ;;  %v922_v33 = vmul.f32 %v3092_v58, %v3861_v24  ;;  %v3863_v40 = vld [vmem:[#allocation32_spill] sm:$0xff] }
 0x1df   : > { %v1481_v42 = vrot.slane %v1480_v43, 1  ;;  %v1542_v23 = vpack.c.bf16 %v1468_v1, %v1468_v1  ;;  %v1472_v16 = vrot.slane %v1471_v44, 2  ;;  %v1287_v34 = vmul.f32 %v3540_v10, %v1215_v36 }
 0x1e0   : > { %vm1069_vm15 = vcmp.gt.f32.partialorder %v1005_v14, 0.0  ;;  %v1289_v41 = vmul.f32 %v3558_v30, %v1217_v6  ;;  %v1154_v47 = vmul.f32 %v3107_v5, %v1005_v14  ;;  %v1486_v21 = vrot.slane %v3661_v48, 2 }
 0x1e1   : > { %v1482_v45 = vadd.f32 %v1481_v42, %v1480_v43  ;;  %v3669_v62 = vunpack.c.l.b16 %v1542_v23  ;;  %v921_v59 = vmul.f32 %v3094_v60, %v3862_v15  ;;  %v923_v53 = vmul.f32 %v3096_v61, %v3863_v40 }
 0x1e2   : > { %v1218_v10 = vsel %vm1069_vm15, %v1005_v14, %v1154_v47  ;;  %v1007_v52 = vadd.f32 %v3100_v63, %v922_v33  ;;  %v3864_v30 = vrot.slane %v3615_v55, 1  ;;  %v1473_v39 = vadd.f32 %v1472_v16, %v1471_v44  ;;  %v3866_v47 = vld [vmem:[#allocation26_spill] sm:$0xff] }
 0x1e3   : > { %v1544_v19 = vpack.c.bf16 %v1482_v45, %v1482_v45  ;;  %v1290_v58 = vmul.f32 %v3549_v17, %v1218_v10  ;;  %v1006_v4 = vadd.f32 %v3102_v2, %v921_v59  ;;  %v1008_v26 = vadd.f32 %v3104_v3, %v923_v53 }
 0x1e4   : > { %v1447_v5 = vadd.f32 %v3864_v30, %v3615_v55  ;;  %vm1071_vm1 = vcmp.gt.f32.partialorder %v1007_v52, 0.0  ;;  %v1156_v60 = vmul.f32 %v3110_v7, %v1007_v52  ;;  %v1474_v12 = vrot.slane %v1473_v39, 1 }
 0x1e5   : > { %v1535_v61 = vpack.c.bf16 %v3567_v49, %v3567_v49  ;;  %v1490_v63 = vadd.f32 %v1290_v58, %v1286_v46  ;;  %vm1070_vm2 = vcmp.gt.f32.partialorder %v1006_v4, 0.0  ;;  %v1155_v8 = vmul.f32 %v3113_v11, %v1006_v4 }
 0x1e6   : > { %vm1072_vm3 = vcmp.gt.f32.partialorder %v1008_v26, 0.0  ;;  %v1220_v55 = vsel %vm1071_vm1, %v1007_v52, %v1156_v60  ;;  %v1157_v43 = vmul.f32 %v3116_v13, %v1008_v26  ;;  %v1475_v17 = vadd.f32 %v1474_v12, %v1473_v39 }
 0x1e7   : > { %v1539_v31 = vpack.c.bf16 %v1447_v5, %v1447_v5  ;;  %v3688_v2 = vunpack.c.l.b16 %v1544_v19  ;;  %v1491_v3 = vrot.slane %v1490_v63, 4  ;;  %v1292_v18 = vmul.f32 %v3572_v51, %v1220_v55 }
 0x1e8   : > { %v1219_v7 = vsel %vm1070_vm2, %v1006_v4, %v1155_v8  ;;  %v1221_v44 = vsel %vm1072_vm3, %v1008_v26, %v1157_v43  ;;  %v1543_v49 = vpack.c.bf16 %v1475_v17, %v1475_v17  ;;  %v1668_v46 = vunpack.c.l.b16 %v1535_v61  ;;  %v3868_v8 = vld [vmem:[#allocation33_spill] sm:$0xff] }
 0x1e9   : > { %v1291_v1 = vmul.f32 %v3592_v54, %v1219_v7  ;;  %v1492_v36 = vadd.f32 %v1491_v3, %v1490_v63  ;;  %v1504_v14 = vadd.f32 %v1292_v18, %v1288_v57  ;;  %v1293_v11 = vmul.f32 %v3598_v56, %v1221_v44  ;;  %v3865_v54 = vld [vmem:[#allocation10_spill] sm:$0xff]  ;;  %v3867_v63 = vld [vmem:[#allocation16_spill] sm:$0xff] }
 0x1ea   : > { %v1672_v42 = vunpack.c.l.b16 %v1539_v31  ;;  %v1676_v13 = vunpack.c.l.b16 %v1543_v49  ;;  %vm1685_vm4 = vcmask 1042434   ;;  %vm1687_vm5 = vcmask 1043459  }
 0x1eb   : > { %v1497_v6 = vadd.f32 %v1291_v1, %v1287_v34  ;;  %v1493_v23 = vrot.slane %v1492_v36, 2  ;;  %v1505_v16 = vrot.slane %v1504_v14, 4  ;;  %v1511_v45 = vadd.f32 %v1293_v11, %v1289_v41 }
 0x1ec   : > { %vm1689_vm6 = vcmask 1044484   ;;  %vm1691_vm7 = vcmask 1045509   ;;  %vm1693_vm8 = vcmask 1046534   ;;  %v1697_v24 = vsel %vm1683_vm0, %v3866_v47, %v3865_v54 }
 0x1ed   : > { %v1498_v51 = vrot.slane %v1497_v6, 4  ;;  %v1494_v33 = vadd.f32 %v1493_v23, %v1492_v36  ;;  %v1506_v57 = vadd.f32 %v1505_v16, %v1504_v14  ;;  %v1512_v15 = vrot.slane %v1511_v45, 4  ;;  %v3869_v36 = vld [vmem:[#allocation23_spill] sm:$0xff]  ;;  %v3870_v16 = vld [vmem:[#allocation25_spill] sm:$0xff] }
 0x1ee   : > { %v1698_v56 = vsel %vm1685_vm4, %v3449_v0, %v1697_v24  ;;  %v1461_v41 = vadd.f32 %v1460_v37, %v3621_v20  ;;  %v1487_v40 = vadd.f32 %v1486_v21, %v3661_v48  ;;  %vm1695_vm9 = vcmask 1047559  }
 0x1ef   : > { %v1499_v34 = vadd.f32 %v1498_v51, %v1497_v6  ;;  %v1699_v59 = vsel %vm1687_vm5, %v3495_v22, %v1698_v56  ;;  %v1495_v53 = vrot.slane %v1494_v33, 1  ;;  %v1507_v10 = vrot.slane %v1506_v57, 2  ;;  %v3872_v56 = vld [vmem:[#allocation11_spill] sm:$0xff] }
 0x1f0   : > { %v1513_v52 = vadd.f32 %v1512_v15, %v1511_v45  ;;  %v1700_v30 = vsel %vm1689_vm6, %v1668_v46, %v1699_v59  ;;  %v1488_v0 = vrot.slane %v1487_v40, 1  ;;  %v1537_v19 = vpack.c.bf16 %v3587_v32, %v3587_v32 }
 0x1f1   : > { %v1500_v5 = vrot.slane %v1499_v34, 2  ;;  %v1701_v39 = vsel %vm1691_vm7, %v1672_v42, %v1700_v30  ;;  %v1496_v22 = vadd.f32 %v1495_v53, %v1494_v33  ;;  %v1508_v58 = vadd.f32 %v1507_v10, %v1506_v57  ;;  %v3871_v33 = vld [vmem:[#allocation9_spill] sm:$0xff] }
 0x1f2   : > { %v1702_v4 = vsel %vm1693_vm8, %v1676_v13, %v1701_v39  ;;  %v1514_v20 = vrot.slane %v1513_v52, 2  ;;  %v1489_v48 = vadd.f32 %v1488_v0, %v1487_v40  ;;  %v1541_v21 = vpack.c.bf16 %v1461_v41, %v1461_v41  ;;  %v2662_v40 = vld [vmem:[%s3810_s5] sm:$0xff]   ;;  %v2664_v30 = vld [vmem:[%s3810_s5 + $0x10] sm:$0xff]   ;;  %v2667_v0 = vld [vmem:[%s3810_s5 + $0x28] sm:$0xff]  }
 0x1f3   : > { %v1501_v37 = vadd.f32 %v1500_v5, %v1499_v34  ;;  %v1670_v26 = vunpack.c.l.b16 %v1537_v19  ;;  %v1546_v60 = vpack.c.bf16 %v1496_v22, %v1496_v22  ;;  %v1509_v12 = vrot.slane %v1508_v58, 1  ;;  %v2665_v5 = vld [vmem:[%s3810_s5 + $0x18] sm:$0xff]   ;;  %v2666_v39 = vld [vmem:[%s3810_s5 + $0x20] sm:$0xff]   ;;  %v2668_v19 = vld [vmem:[%s3810_s5 + $0x30] sm:$0xff]  }
 0x1f4   : > { %v1515_v61 = vadd.f32 %v1514_v20, %v1513_v52  ;;  %v1711_v55 = vsel %vm1683_vm0, %v3868_v8, %v3867_v63  ;;  %v1545_v17 = vpack.c.bf16 %v1489_v48, %v1489_v48  ;;  %v1674_v31 = vunpack.c.l.b16 %v1541_v21  ;;  %v2669_v22 = vld [vmem:[%s3810_s5 + $0x38] sm:$0xff]   ;;  %v2672_v20 = vld [vmem:[#allocation6 + $0x10] sm:$0xff]   ;;  %v2674_v48 = vld [vmem:[#allocation6 + $0x20] sm:$0xff]  }
 0x1f5   : > { %v1502_v43 = vrot.slane %v1501_v37, 1  ;;  %v1712_v32 = vsel %vm1685_vm4, %v3463_v50, %v1711_v55  ;;  %v1510_v3 = vadd.f32 %v1509_v12, %v1508_v58  ;;  %v1679_v1 = vunpack.c.l.b16 %v1546_v60  ;;  %v2670_v58 = vld [vmem:[#allocation6] sm:$0xff]   ;;  %v2675_v21 = vld [vmem:[#allocation6 + $0x28] sm:$0xff]   ;;  %v2374_v12 = vld [vmem:[%s3812_s7] ss:$0 sm:$0xff] }
 0x1f6   : > { %v1516_v18 = vrot.slane %v1515_v61, 1  ;;  %v1713_v7 = vsel %vm1687_vm5, %v3511_v9, %v1712_v32  ;;  %v1678_v49 = vunpack.c.l.b16 %v1545_v17  ;;  %v1686_v14 = vsel %vm1685_vm4, %v3436_v38, %v3869_v36 }
 0x1f7   : > { %v1503_v44 = vadd.f32 %v1502_v43, %v1501_v37  ;;  %v1714_v46 = vsel %vm1689_vm6, %v1670_v26, %v1713_v7  ;;  %v1548_v11 = vpack.c.bf16 %v1510_v3, %v1510_v3  ;;  %v1688_v50 = vsel %vm1687_vm5, %v3478_v35, %v1686_v14  ;;  %v2673_v37 = vld [vmem:[#allocation6 + $0x18] sm:$0xff]  }
 0x1f8   : > { %v1517_v42 = vadd.f32 %v1516_v18, %v1515_v61  ;;  %v1715_v6 = vsel %vm1691_vm7, %v1674_v31, %v1714_v46  ;;  %v1690_v9 = vsel %vm1689_vm6, %v3544_v25, %v1688_v50  ;;  %v1705_v45 = vsel %vm1685_vm4, %v3444_v29, %v3870_v16 }
 0x1f9   : > { %v1547_v13 = vpack.c.bf16 %v1503_v44, %v1503_v44  ;;  %v1716_v23 = vsel %vm1693_vm8, %v1678_v49, %v1715_v6  ;;  %v1692_v38 = vsel %vm1691_vm7, %v3619_v28, %v1690_v9  ;;  %v1681_v54 = vunpack.c.l.b16 %v1548_v11  ;;  %v2677_v44 = vld [vmem:[#allocation6 + $0x38] sm:$0xff]   ;;  %v2407_v49 = vld [vmem:[%s3812_s7 + $0x1] ss:$0 sm:$0xff]  ;;  %v2416_v9 = vld [vmem:[%s3812_s7 + $0x2] ss:$0 sm:$0xff] }
 0x1fa   : > { %v1549_v51 = vpack.c.bf16 %v1517_v42, %v1517_v42  ;;  %v1706_v47 = vsel %vm1687_vm5, %v3482_v27, %v1705_v45  ;;  %v1694_v35 = vsel %vm1693_vm8, %v3669_v62, %v1692_v38  ;;  %v2796_v34 = vmov 0.0  }
 0x1fb   : > { %v1680_v24 = vunpack.c.l.b16 %v1547_v13  ;;  %v1707_v57 = vsel %vm1689_vm6, %v3871_v33, %v1706_v47  ;;  %v1696_v15 = vsel %vm1695_vm9, %v1679_v1, %v1694_v35  ;;  %2490 = vmatprep.subr.bf16.mxu0 %v2796_v34  ;;  %2510 = vmatprep.subr.bf16.mxu1 %v2796_v34  ;;  %vm2797_vm0 = vmmov 0   ;;  %v2676_v1 = vld [vmem:[#allocation6 + $0x30] sm:$0xff]  }
 0x1fc   : > { %v1682_v25 = vunpack.c.l.b16 %v1549_v51  ;;  %v1708_v29 = vsel %vm1691_vm7, %v3872_v56, %v1707_v57  ;;  %v1718_v10 = vpack.c.b16 %v1696_v15, %v1696_v15  ;;  %v3873_v13 = vlaneseq }
 0x1fd   : > { %v1703_v27 = vsel %vm1695_vm9, %v1680_v24, %v1702_v4  ;;  %v1709_v28 = vsel %vm1693_vm8, %v3688_v2, %v1708_v29  ;;  %v2663_v2 = vld [vmem:[%s3810_s5 + $0x8] sm:$0xff]   ;;  %v2671_v4 = vld [vmem:[#allocation6 + $0x8] sm:$0xff]  }
 0x1fe   : > { %v1719_v62 = vpack.c.b16 %v1703_v27, %v1703_v27  ;;  %v1717_v59 = vsel %vm1695_vm9, %v1682_v25, %v1716_v23  ;;  %v1710_v41 = vsel %vm1695_vm9, %v1681_v54, %v1709_v28  ;;  %v2220_v23 = vand.u32 127, %v3873_v13 }
 0x1ff   : > { %v1721_v53 = vpack.c.b16 %v1717_v59, %v1717_v59  ;;  %v1720_v52 = vpack.c.b16 %v1710_v41, %v1710_v41 }
 0x200   : > { %1950 = vmatprep.mubr.bf16.mxu0 %v1719_v62  ;;  %vm2221_vm10 = vcmp.lt.s32.totalorder %v2220_v23, 8 }
 0x201   : > { %1990 = vmatprep.mubr.bf16.mxu1 %v1721_v53  ;;  %1951 = vmatmul.mubr.bf16.vlgmr.msra.gmra.mrb[32].mxu0 %v1718_v10 }
 0x202   : > { %1991 = vmatmul.mubr.bf16.vlgmr.msra.gmra.mrb[32].mxu1 %v1720_v52  ;;  %2491 = vmatpush3.bf16.msra.mxu0 %v2662_v40 }
 0x203   : > { %2492 = vmatprep.subr.bf16.mxu0 %v2796_v34  ;;  %2506 = vmatprep.mubr.msk.bf16.mxu0 %vm2797_vm0, %v2796_v34 }
 0x204   : > { %2526 = vmatprep.mubr.msk.bf16.mxu1 %vm2797_vm0, %v2796_v34  ;;  %2511 = vmatpush3.bf16.msra.mxu1 %v2670_v58 }
 0x205   : > { %2512 = vmatprep.subr.bf16.mxu1 %v2796_v34 }
 0x206   : > { %2493 = vmatpush3.bf16.msra.mxu0 %v2663_v2 }
 0x207   : > { %2494 = vmatprep.subr.bf16.mxu0 %v2796_v34 }
 0x208   : > { %2513 = vmatpush3.bf16.msra.mxu1 %v2671_v4 }
 0x209   : > { %2514 = vmatprep.subr.bf16.mxu1 %v2796_v34 }
 0x20a   : > { %2495 = vmatpush3.bf16.msra.mxu0 %v2664_v30 }
 0x20b   : > { %2496 = vmatprep.subr.bf16.mxu0 %v2796_v34 }
 0x20c   : > { %2515 = vmatpush3.bf16.msra.mxu1 %v2672_v20 }
 0x20d   : > { %2516 = vmatprep.subr.bf16.mxu1 %v2796_v34 }
 0x20e   : > { %2497 = vmatpush3.bf16.msra.mxu0 %v2665_v5 }
 0x20f   : > { %2498 = vmatprep.subr.bf16.mxu0 %v2796_v34 }
 0x210   : > { %2517 = vmatpush3.bf16.msra.mxu1 %v2673_v37 }
 0x211   : > { %2518 = vmatprep.subr.bf16.mxu1 %v2796_v34 }
 0x212   : > { %2499 = vmatpush3.bf16.msra.mxu0 %v2666_v39 }
 0x213   : > { %2500 = vmatprep.subr.bf16.mxu0 %v2796_v34 }
 0x214   : > { %2519 = vmatpush3.bf16.msra.mxu1 %v2674_v48 }
 0x215   : > { %2520 = vmatprep.subr.bf16.mxu1 %v2796_v34 }
 0x216   : > { %2501 = vmatpush3.bf16.msra.mxu0 %v2667_v0 }
 0x217   : > { %2502 = vmatprep.subr.bf16.mxu0 %v2796_v34 }
 0x218   : > { %2521 = vmatpush3.bf16.msra.mxu1 %v2675_v21 }
 0x219   : > { %2522 = vmatprep.subr.bf16.mxu1 %v2796_v34 }
 0x21a   : > { %2503 = vmatpush3.bf16.msra.mxu0 %v2668_v19 }
 0x21b   : > { %2504 = vmatprep.subr.bf16.mxu0 %v2796_v34 }
 0x21c   : > { %2523 = vmatpush3.bf16.msra.mxu1 %v2676_v1 }
 0x21d   : > { %2524 = vmatprep.subr.bf16.mxu1 %v2796_v34 }
 0x21e   : > { %2505 = vmatpush3.bf16.msra.mxu0 %v2669_v22 }
 0x220   : > { %2525 = vmatpush3.bf16.msra.mxu1 %v2677_v44 }
 0x2d4   : > { %v2444_v26 = vpop.f32.mrb[32].mxu0 }
 0x2d5   : > { %v2466_v60 = vpop.f32.mrb[32].mxu1  ;;  %v2445_v61 = vpop.f32.mrb[33].mxu0 }
 0x2d6   : > { %v2446_v63 = vadd.f32 %v2445_v61, %v2444_v26  ;;  %v2467_v8 = vpop.f32.mrb[33].mxu1  ;;  %v2447_v55 = vpop.f32.mrb[34].mxu0 }
 0x2d7   : > { %v2468_v43 = vadd.f32 %v2467_v8, %v2466_v60  ;;  %v2469_v17 = vpop.f32.mrb[34].mxu1  ;;  %v2448_v31 = vpop.f32.mrb[35].mxu0 }
 0x2d8   : > { %v1953_v32 = vadd.f32 %v2446_v63, %v2374_v12  ;;  %v2470_v3 = vpop.f32.mrb[35].mxu1 }
 0x2da   : > { %v1993_v18 = vadd.f32 %v2468_v43, %v1953_v32 }
 0x2dc   : > { %v1998_v7 = vpack.c.bf16 %v1993_v18, %v1993_v18 }
 0x2de   : > { %2507 = vmatmul.mubr.bf16.vlgmr.msra.gmra.mrb[36].mxu0 %v1998_v7 }
 0x3b1   : > { %v2102_v46 = vpop.f32.mrb[36].mxu0 }
 0x3b2   : > { %v2103_v36 = vadd.f32 %v2407_v49, %v2102_v46  ;;  %v2508_v14 = vpop.f32.mrb[37].mxu0 }
 0x3b3   : > { %v2105_v11 = vpop.f32.mrb[38].mxu0 }
 0x3b4   : > { %v2108_v42 = vmax.f32 %v2103_v36, 0.0  ;;  %v2509_v6 = vpop.f32.mrb[39].mxu0 }
 0x3b6   : > { %v2109_v50 = vpack.c.bf16 %v2108_v42, %v2108_v42 }
 0x3b8   : > { %2527 = vmatmul.mubr.bf16.vlgmr.msra.gmra.mrb[36].mxu1 %v2109_v50 }
 0x48b   : > { %v2213_v16 = vpop.f32.mrb[36].mxu1 }
 0x48c   : > { %v2214_v45 = vadd.f32 %v2416_v9, %v2213_v16  ;;  %v2528_v51 = vpop.f32.mrb[37].mxu1 }
 0x48d   : > { %v2216_v38 = vpop.f32.mrb[38].mxu1 }
 0x48e   : > { %v2529_v54 = vpop.f32.mrb[39].mxu1  ;;  %v2222_v47 = vsel %vm2221_vm10, %v2214_v45, -1e+30 }
 0x48f   : > { %2223 = vmax.xlane.f32.xlu0 %v2222_v47 }
 0x51c   : > { %v2224_v24 = vpop.xlane.xlu0 %2223 }
 0x51d   : > { %v2225_v35 = vsub.f32 %v2222_v47, %v2224_v24 }
 0x51f   : > { %v2226_v33 = vmul.f32 1.442695, %v2225_v35 }
 0x521   : > { %2678 = vpow2.f32 %v2226_v33 }
 0x52b   : > { %v2679_v57 = vpop.eup %2678 }
 0x52c   : > { %2228 = vadd.xlane.f32.xlu0 %v2679_v57 }
 0x5b9   : > { %v2229_v25 = vpop.xlane.xlu0 %2228 }
 0x5ba   : > { %2680 = vlog2.f32 %v2229_v25 }
 0x5c4   : > { %v2681_v15 = vpop.eup %2680 }
 0x5c5   : > { %v2231_v56 = vmul.f32 0.6931472, %v2681_v15 }
 0x5c7   : > { %v2232_v29 = vadd.f32 %v2231_v56, %v2224_v24 }
 0x5c9   : > { %v2233_v34 = vsub.f32 %v2222_v47, %v2232_v29 }
 0x5cb   : > { %2234 = vst [vmem:[%s350_s29] sm:$0xff] %v2233_v34 }
 0x5cc PF: > { %s20_s27 = sadd.s32 1, %s2788_s27  }
 0x5cd   : > { %p17_p5 = scmp.ge.s32.totalorder %s20_s27, 4  }
 0x5cf   :  { %19 = sbr.rel (!%p17_p5) target bundleno = 2 (0x2), region = 97 }
 0x5d6   :  { %2254 = vsyncpa [#allocation3], 1 }
 0x5d7   :  { %2256 = vsyncpa [#allocation3 + $0x1], 1 }
 0x5d8   :  { %2257 = vsyncpa [#allocation5], 1 }

</bundles_post_ra>
